<compile_context>
chip_gen: v5e
topology: v5e:2x2
jax: 0.10.0
libtpu: 0.0.40
codegen_flags: <defaults>
</compile_context>

<pallas_src>
import math
import functools

import jax
import jax.numpy as jnp
from jax.experimental import pallas as pl
from jax.experimental.pallas import tpu as pltpu


# ----------------------------------------------------------------------------
# In-kernel math helpers.  Weights are pre-transposed to [in, out]; biases and
# LN params are [1, n].
# ----------------------------------------------------------------------------
def _matmul3d(x, w):
    """x: [B, S, K] @ w: [K, N] -> [B, S, N] (single 2-D MXU matmul)."""
    B, S, K = x.shape
    y = jax.lax.dot_general(x.reshape(B * S, K), w,
                            (((1,), (0,)), ((), ())),
                            preferred_element_type=jnp.float32)
    return y.reshape(B, S, w.shape[1])


def _linear3d(x, w, b):
    return _matmul3d(x, w) + b


def _linear2d(x, w, b):
    return jax.lax.dot_general(x, w, (((1,), (0,)), ((), ())),
                               preferred_element_type=jnp.float32) + b


def _layer_norm(x, w, b, eps=1e-5):
    mean = jnp.mean(x, axis=-1, keepdims=True)
    var = jnp.mean(jnp.square(x - mean), axis=-1, keepdims=True)
    return (x - mean) * jax.lax.rsqrt(var + eps) * w + b


def _mha(x, qkv_w, qkv_b, out_w, out_b, num_heads):
    """nn.MultiheadAttention (batch_first, self-attention, no mask).

    qkv_w/qkv_b are the packed in_proj params, pre-transposed to [E, 3E] and
    with the 1/sqrt(head_dim) scale already folded into the q columns.
    """
    B, S, E = x.shape
    hd = E // num_heads
    qkv = _linear3d(x, qkv_w, qkv_b)              # [B, S, 3E], one packed matmul

    # Stack heads along the (leading) batch axis -> [(h b), S, hd] so the
    # score / softmax / context steps run once each as batched einsums.
    # TODO(synk): single einshape instead of slices+concat when supported.
    def heads_to_batch(base):
        return jnp.concatenate(
            [qkv[..., base + h * hd: base + (h + 1) * hd]
             for h in range(num_heads)], axis=0)

    qh = heads_to_batch(0)
    kh = heads_to_batch(E)
    vh = heads_to_batch(2 * E)

    s = jnp.einsum('bqd,bkd->bqk', qh, kh,
                   preferred_element_type=jnp.float32)          # [(h b), S, S]
    s = s - jnp.max(s, axis=-1, keepdims=True)
    p = jnp.exp(s)
    p = p * pl.reciprocal(jnp.sum(p, axis=-1, keepdims=True), approx=True)
    ctx = jnp.einsum('bqk,bkd->bqd', p, vh,
                     preferred_element_type=jnp.float32)        # [(h b), S, hd]

    # Undo the head-major batch stacking back to [B, S, E], then ONE
    # [B*S, E] x [E, E] output projection (no per-head out-proj matmuls).
    ctx = jnp.concatenate([ctx[h * B:(h + 1) * B] for h in range(num_heads)],
                          axis=-1)
    return _linear3d(ctx, out_w, out_b)


# ----------------------------------------------------------------------------
# Fused encoder kernel: embedding+PE input -> L layers -> max-pool -> [mu|logvar].
# Single invocation (no grid); all stacked weights are VMEM-resident.
# ----------------------------------------------------------------------------
def _encoder_kernel(num_layers, num_heads,
                    emb_ref,
                    qkv_w_ref, qkv_b_ref, ow_ref, ob_ref,
                    l1w_ref, l1b_ref, l2w_ref, l2b_ref,
                    n1w_ref, n1b_ref, n2w_ref, n2b_ref,
                    head_w_ref, head_b_ref,
                    out_ref):
    x = emb_ref[...].astype(jnp.float32)

    for l in range(num_layers):   # static unroll; per-layer weights indexed statically
        # --- self-attention + residual + norm1 (post-norm) ---
        attn = _mha(x, qkv_w_ref[l], qkv_b_ref[l], ow_ref[l], ob_ref[l],
                    num_heads)
        x = _layer_norm(x + attn, n1w_ref[l], n1b_ref[l])

        # --- feed-forward (relu) + residual + norm2 ---
        hidden = jnp.maximum(_linear3d(x, l1w_ref[l], l1b_ref[l]), 0.0)
        x = _layer_norm(x + _linear3d(hidden, l2w_ref[l], l2b_ref[l]),
                        n2w_ref[l], n2b_ref[l])

    # --- max-pool over sequence + fused [E, 2E] mu/logvar head ---
    pooled = jnp.max(x, axis=1)                    # torch.max(encoded, dim=1).values
    out_ref[...] = _linear2d(pooled, head_w_ref[...],
                             head_b_ref[...]).astype(out_ref.dtype)


def _encoder_forward(emb, prep, num_heads):
    B, S, E = emb.shape
    L = prep["qkv_w"].shape[0]
    H = prep["l1_w"].shape[2]

    args = (emb,
            prep["qkv_w"], prep["qkv_b"], prep["out_w"], prep["out_b"],
            prep["l1_w"], prep["l1_b"], prep["l2_w"], prep["l2_b"],
            prep["n1_w"], prep["n1_b"], prep["n2_w"], prep["n2_b"],
            prep["head_w"], prep["head_b"])

    # Advisory cost estimate so XLA schedules surrounding ops around the call.
    flops_layer = (2 * B * S * E * 3 * E        # packed qkv projection
                   + 2 * 2 * B * S * S * E      # scores + context
                   + 2 * B * S * E * E          # attention out projection
                   + 2 * 2 * B * S * E * H)     # feed-forward linear1 + linear2
    flops = L * flops_layer + 2 * B * E * (2 * E)
    transcendentals = L * (B * num_heads * S * S + 3 * B * S)
    bytes_accessed = (sum(int(a.size) * a.dtype.itemsize for a in args)
                      + B * 2 * E * 4)

    out = pl.pallas_call(
        functools.partial(_encoder_kernel, int(L), num_heads),
        out_shape=jax.ShapeDtypeStruct((B, 2 * E), jnp.float32),
        cost_estimate=pl.CostEstimate(flops=int(flops),
                                      transcendentals=int(transcendentals),
                                      bytes_accessed=int(bytes_accessed)),
    )(*args)

    return out[:, :E], out[:, E:]


@functools.partial(jax.jit, static_argnames=("num_heads",))
def pooling_transformer_encoder(prep, tokens, *, num_heads):
    """tokens: int32 [B, S] (or [S]) -> (mu, logvar), each [B, E]."""
    if tokens.ndim == 1:
        tokens = tokens[None, :]
    emb = jnp.take(prep["embedding"], tokens, axis=0)        # gather in JAX glue
    emb = emb + prep["pe"][: tokens.shape[0]]                # pe[:x.size(0)] quirk (batch!)
    # TODO(synk): at production B*S*E, move the gather + PE add into the kernel
    # (scalar-prefetched token ids + DMA gather) to skip the HBM round trip.
    return _encoder_forward(emb.astype(jnp.float32), prep, num_heads)


# ----------------------------------------------------------------------------
# Parameters: deterministic torch-layout init + one-time prep pass
# (transpose to [in, out], stack per-layer tensors on L, fold attention scale,
#  fuse fc_mu / fc_logvar into one [E, 2E] head).
# ----------------------------------------------------------------------------
def _make_pe(max_len, embed_dim):
    pos = jnp.arange(max_len, dtype=jnp.float32)[:, None]
    div = jnp.exp(jnp.arange(0, embed_dim, 2, dtype=jnp.float32)
                  * (-math.log(10000.0) / embed_dim))
    pe = jnp.zeros((max_len, embed_dim), jnp.float32)
    pe = pe.at[:, 0::2].set(jnp.sin(pos * div))
    pe = pe.at[:, 1::2].set(jnp.cos(pos * div))
    return pe[:, None, :]                                    # [max_len, 1, E] torch buffer


def init_params(key, vocab, embed_dim, hidden_dim, num_layers, max_len=125):
    E, H = embed_dim, hidden_dim
    keys = iter(jax.random.split(key, 8 * num_layers + 8))

    def w(shape, scale=0.1):
        return jax.random.normal(next(keys), shape, jnp.float32) * scale

    layers = []
    for _ in range(num_layers):
        layers.append(dict(
            in_proj_w=w((3 * E, E)), in_proj_b=w((3 * E,), 0.02),
            out_proj_w=w((E, E)), out_proj_b=w((E,), 0.02),
            lin1_w=w((H, E)), lin1_b=w((H,), 0.02),
            lin2_w=w((E, H)), lin2_b=w((E,), 0.02),
            norm1_w=jnp.ones((E,), jnp.float32), norm1_b=jnp.zeros((E,), jnp.float32),
            norm2_w=jnp.ones((E,), jnp.float32), norm2_b=jnp.zeros((E,), jnp.float32)))

    return dict(
        embedding=w((vocab, E), 0.5),
        pe=_make_pe(max_len, E),
        layers=layers,
        fc_mu_w=w((E, E)), fc_mu_b=w((E,), 0.02),
        fc_logvar_w=w((E, E)), fc_logvar_b=w((E,), 0.02),
    )


def prepare_params(params, num_heads):
    """One-time prep: torch [out,in] -> [in,out], stack layers on L,
    fold 1/sqrt(hd) into q columns, fuse fc_mu/fc_logvar into one head."""
    E = params["fc_mu_w"].shape[0]
    hd = E // num_heads
    scale = 1.0 / math.sqrt(hd)
    col_scale = jnp.concatenate([jnp.full((E,), scale, jnp.float32),
                                 jnp.ones((2 * E,), jnp.float32)])[None, :]

    cols = {k: [] for k in ("qkv_w", "qkv_b", "out_w", "out_b",
                            "l1_w", "l1_b", "l2_w", "l2_b",
                            "n1_w", "n1_b", "n2_w", "n2_b")}
    for lp in params["layers"]:
        cols["qkv_w"].append(lp["in_proj_w"].T * col_scale)      # [E, 3E], q pre-scaled
        cols["qkv_b"].append(lp["in_proj_b"][None, :] * col_scale)
        cols["out_w"].append(lp["out_proj_w"].T)                 # [E, E]
        cols["out_b"].append(lp["out_proj_b"][None, :])
        cols["l1_w"].append(lp["lin1_w"].T)                      # [E, H]
        cols["l1_b"].append(lp["lin1_b"][None, :])
        cols["l2_w"].append(lp["lin2_w"].T)                      # [H, E]
        cols["l2_b"].append(lp["lin2_b"][None, :])
        cols["n1_w"].append(lp["norm1_w"][None, :])
        cols["n1_b"].append(lp["norm1_b"][None, :])
        cols["n2_w"].append(lp["norm2_w"][None, :])
        cols["n2_b"].append(lp["norm2_b"][None, :])

    prep = {k: jnp.stack(v, axis=0) for k, v in cols.items()}
    prep.update(
        embedding=params["embedding"], pe=params["pe"],
        head_w=jnp.concatenate([params["fc_mu_w"].T, params["fc_logvar_w"].T],
                               axis=1),                           # [E, 2E]
        head_b=jnp.concatenate([params["fc_mu_b"],
                                params["fc_logvar_b"]])[None, :]) # [1, 2E]
    return prep


# ----------------------------------------------------------------------------
# Pure-JAX reference (torch-layout params) for a correctness check.
# ----------------------------------------------------------------------------
def _layer_norm_ref(x, w, b, eps=1e-5):
    mean = jnp.mean(x, axis=-1, keepdims=True)
    var = jnp.mean(jnp.square(x - mean), axis=-1, keepdims=True)
    return (x - mean) / jnp.sqrt(var + eps) * w + b


def reference_forward(params, tokens, num_heads):
    if tokens.ndim == 1:
        tokens = tokens[None, :]
    x = params["embedding"][tokens]
    x = x + params["pe"][: tokens.shape[0]]
    E = x.shape[-1]
    hd = E // num_heads
    for lp in params["layers"]:
        q = x @ lp["in_proj_w"][0:E].T + lp["in_proj_b"][0:E]
        k = x @ lp["in_proj_w"][E:2 * E].T + lp["in_proj_b"][E:2 * E]
        v = x @ lp["in_proj_w"][2 * E:].T + lp["in_proj_b"][2 * E:]
        heads = []
        for h in range(num_heads):
            sl = slice(h * hd, (h + 1) * hd)
            s = jnp.einsum('bqd,bkd->bqk', q[..., sl], k[..., sl]) / math.sqrt(hd)
            p = jax.nn.softmax(s, axis=-1)
            heads.append(jnp.einsum('bqk,bkd->bqd', p, v[..., sl]))
        attn = jnp.concatenate(heads, -1) @ lp["out_proj_w"].T + lp["out_proj_b"]
        x = _layer_norm_ref(x + attn, lp["norm1_w"], lp["norm1_b"])
        ff = (jnp.maximum(x @ lp["lin1_w"].T + lp["lin1_b"], 0.0)
              @ lp["lin2_w"].T + lp["lin2_b"])
        x = _layer_norm_ref(x + ff, lp["norm2_w"], lp["norm2_b"])
    pooled = jnp.max(x, axis=1)
    mu = pooled @ params["fc_mu_w"].T + params["fc_mu_b"]
    logvar = pooled @ params["fc_logvar_w"].T + params["fc_logvar_b"]
    return mu, logvar


# ----------------------------------------------------------------------------
if __name__ == "__main__":
    input_dim, embed_dim, num_heads, hidden_dim, num_layers = 32, 32, 2, 64, 2
    B, S = 2, 8

    key = jax.random.PRNGKey(0)
    k_params, k_x = jax.random.split(key)

    params = init_params(k_params, input_dim, embed_dim, hidden_dim, num_layers,
                         max_len=125)
    prep = prepare_params(params, num_heads)
    x = jax.random.randint(k_x, (B, S), 0, input_dim, dtype=jnp.int32)

    mu, logvar = pooling_transformer_encoder(prep, x, num_heads=num_heads)
    jax.block_until_ready((mu, logvar))

    assert mu.shape == (B, embed_dim) and logvar.shape == (B, embed_dim)

    mu_ref, lv_ref = reference_forward(params, x, num_heads)
    assert jnp.allclose(mu, mu_ref, rtol=5e-2, atol=5e-2), "mu mismatch vs reference"
    assert jnp.allclose(logvar, lv_ref, rtol=5e-2, atol=5e-2), "logvar mismatch vs reference"

    print("KERNEL_OK")
</pallas_src>

<mosaic_0001>
module attributes {stable_mosaic.version = 11 : i64} {
  func.func @_encoder_kernel(%arg0: memref<2x8x32xf32, #tpu.memory_space<vmem>>, %arg1: memref<2x32x96xf32, #tpu.memory_space<vmem>>, %arg2: memref<2x1x96xf32, #tpu.memory_space<vmem>>, %arg3: memref<2x32x32xf32, #tpu.memory_space<vmem>>, %arg4: memref<2x1x32xf32, #tpu.memory_space<vmem>>, %arg5: memref<2x32x64xf32, #tpu.memory_space<vmem>>, %arg6: memref<2x1x64xf32, #tpu.memory_space<vmem>>, %arg7: memref<2x64x32xf32, #tpu.memory_space<vmem>>, %arg8: memref<2x1x32xf32, #tpu.memory_space<vmem>>, %arg9: memref<2x1x32xf32, #tpu.memory_space<vmem>>, %arg10: memref<2x1x32xf32, #tpu.memory_space<vmem>>, %arg11: memref<2x1x32xf32, #tpu.memory_space<vmem>>, %arg12: memref<2x1x32xf32, #tpu.memory_space<vmem>>, %arg13: memref<32x64xf32, #tpu.memory_space<vmem>>, %arg14: memref<1x64xf32, #tpu.memory_space<vmem>>, %arg15: memref<2x64xf32, #tpu.memory_space<vmem>>) attributes {dimension_semantics = [], scalar_prefetch = 0 : i64, scratch_operands = 0 : i64, tpu.core_type = #tpu.core_type<tc>} {
    %c0 = arith.constant 0 : index
    %c0_0 = arith.constant 0 : index
    %c0_1 = arith.constant 0 : index
    %0 = vector.load %arg0[%c0, %c0_0, %c0_1] : memref<2x8x32xf32, #tpu.memory_space<vmem>>, vector<2x8x32xf32>
    %c0_2 = arith.constant 0 : index
    %c0_3 = arith.constant 0 : index
    %c0_4 = arith.constant 0 : index
    %1 = vector.load %arg1[%c0_2, %c0_3, %c0_4] : memref<2x32x96xf32, #tpu.memory_space<vmem>>, vector<1x32x96xf32>
    %2 = vector.shape_cast %1 : vector<1x32x96xf32> to vector<32x96xf32>
    %c0_5 = arith.constant 0 : index
    %c0_6 = arith.constant 0 : index
    %c0_7 = arith.constant 0 : index
    %3 = vector.load %arg2[%c0_5, %c0_6, %c0_7] : memref<2x1x96xf32, #tpu.memory_space<vmem>>, vector<1x1x96xf32>
    %4 = vector.shape_cast %3 : vector<1x1x96xf32> to vector<1x96xf32>
    %c0_8 = arith.constant 0 : index
    %c0_9 = arith.constant 0 : index
    %c0_10 = arith.constant 0 : index
    %5 = vector.load %arg3[%c0_8, %c0_9, %c0_10] : memref<2x32x32xf32, #tpu.memory_space<vmem>>, vector<1x32x32xf32>
    %6 = vector.shape_cast %5 : vector<1x32x32xf32> to vector<32x32xf32>
    %c0_11 = arith.constant 0 : index
    %c0_12 = arith.constant 0 : index
    %c0_13 = arith.constant 0 : index
    %7 = vector.load %arg4[%c0_11, %c0_12, %c0_13] : memref<2x1x32xf32, #tpu.memory_space<vmem>>, vector<1x1x32xf32>
    %8 = vector.shape_cast %7 : vector<1x1x32xf32> to vector<1x32xf32>
    %9 = vector.shape_cast %0 : vector<2x8x32xf32> to vector<16x32xf32>
    %cst = arith.constant dense<0.000000e+00> : vector<16x96xf32>
    %10 = tpu.matmul %9, %2, %cst {dimension_numbers = #tpu.dot_dimension_numbers<[1], [0], [0], [1], [0, 0, 1, 1], [], []>} : vector<16x32xf32>, vector<32x96xf32>, vector<16x96xf32> -> vector<16x96xf32>
    %11 = vector.shape_cast %10 : vector<16x96xf32> to vector<2x8x96xf32>
    %12 = vector.shape_cast %4 : vector<1x96xf32> to vector<1x1x96xf32>
    %13 = vector.broadcast %12 : vector<1x1x96xf32> to vector<2x8x96xf32>
    %14 = arith.addf %11, %13 : vector<2x8x96xf32>
    %15 = vector.extract_strided_slice %14 {offsets = [0, 0, 0], sizes = [2, 8, 16], strides = [1, 1, 1]} : vector<2x8x96xf32> to vector<2x8x16xf32>
    %16 = vector.extract_strided_slice %14 {offsets = [0, 0, 16], sizes = [2, 8, 16], strides = [1, 1, 1]} : vector<2x8x96xf32> to vector<2x8x16xf32>
    %17 = tpu.concatenate %15, %16 in 0 : vector<2x8x16xf32>, vector<2x8x16xf32> -> vector<4x8x16xf32>
    %18 = vector.extract_strided_slice %14 {offsets = [0, 0, 32], sizes = [2, 8, 16], strides = [1, 1, 1]} : vector<2x8x96xf32> to vector<2x8x16xf32>
    %19 = vector.extract_strided_slice %14 {offsets = [0, 0, 48], sizes = [2, 8, 16], strides = [1, 1, 1]} : vector<2x8x96xf32> to vector<2x8x16xf32>
    %20 = tpu.concatenate %18, %19 in 0 : vector<2x8x16xf32>, vector<2x8x16xf32> -> vector<4x8x16xf32>
    %21 = vector.extract_strided_slice %14 {offsets = [0, 0, 64], sizes = [2, 8, 16], strides = [1, 1, 1]} : vector<2x8x96xf32> to vector<2x8x16xf32>
    %22 = vector.extract_strided_slice %14 {offsets = [0, 0, 80], sizes = [2, 8, 16], strides = [1, 1, 1]} : vector<2x8x96xf32> to vector<2x8x16xf32>
    %23 = tpu.concatenate %21, %22 in 0 : vector<2x8x16xf32>, vector<2x8x16xf32> -> vector<4x8x16xf32>
    "tpu.trace_start"() <{level = 10 : i32, message = "bqd,bkd->bqk"}> : () -> ()
    %cst_14 = arith.constant dense<0.000000e+00> : vector<4x8x8xf32>
    %24 = tpu.matmul %17, %20, %cst_14 {dimension_numbers = #tpu.dot_dimension_numbers<[2], [2], [1], [1], [0, 0, 0, 1, 1, 1], [0], [0]>} : vector<4x8x16xf32>, vector<4x8x16xf32>, vector<4x8x8xf32> -> vector<4x8x8xf32>
    "tpu.trace_stop"() : () -> ()
    %cst_15 = arith.constant dense<0xFF800000> : vector<4x8xf32>
    %25 = vector.multi_reduction <maximumf>, %24, %cst_15 [2] : vector<4x8x8xf32> to vector<4x8xf32>
    %26 = vector.shape_cast %25 : vector<4x8xf32> to vector<4x8x1xf32>
    %27 = vector.broadcast %26 : vector<4x8x1xf32> to vector<4x8x8xf32>
    %28 = arith.subf %24, %27 : vector<4x8x8xf32>
    %29 = math.exp %28 : vector<4x8x8xf32>
    %cst_16 = arith.constant dense<0.000000e+00> : vector<4x8xf32>
    %30 = vector.multi_reduction <add>, %29, %cst_16 [2] : vector<4x8x8xf32> to vector<4x8xf32>
    %31 = vector.shape_cast %30 : vector<4x8xf32> to vector<4x8x1xf32>
    %32 = tpu.reciprocal %31 {approx = true} : vector<4x8x1xf32> -> vector<4x8x1xf32>
    %33 = vector.broadcast %32 : vector<4x8x1xf32> to vector<4x8x8xf32>
    %34 = arith.mulf %29, %33 : vector<4x8x8xf32>
    "tpu.trace_start"() <{level = 10 : i32, message = "bqk,bkd->bqd"}> : () -> ()
    %cst_17 = arith.constant dense<0.000000e+00> : vector<4x8x16xf32>
    %35 = tpu.matmul %34, %23, %cst_17 {dimension_numbers = #tpu.dot_dimension_numbers<[2], [1], [1], [2], [0, 0, 0, 1, 1, 2], [0], [0]>} : vector<4x8x8xf32>, vector<4x8x16xf32>, vector<4x8x16xf32> -> vector<4x8x16xf32>
    "tpu.trace_stop"() : () -> ()
    %36 = vector.extract_strided_slice %35 {offsets = [0, 0, 0], sizes = [2, 8, 16], strides = [1, 1, 1]} : vector<4x8x16xf32> to vector<2x8x16xf32>
    %37 = vector.extract_strided_slice %35 {offsets = [2, 0, 0], sizes = [2, 8, 16], strides = [1, 1, 1]} : vector<4x8x16xf32> to vector<2x8x16xf32>
    %38 = tpu.concatenate %36, %37 in 2 : vector<2x8x16xf32>, vector<2x8x16xf32> -> vector<2x8x32xf32>
    %39 = vector.shape_cast %38 : vector<2x8x32xf32> to vector<16x32xf32>
    %cst_18 = arith.constant dense<0.000000e+00> : vector<16x32xf32>
    %40 = tpu.matmul %39, %6, %cst_18 {dimension_numbers = #tpu.dot_dimension_numbers<[1], [0], [0], [1], [0, 0, 1, 1], [], []>} : vector<16x32xf32>, vector<32x32xf32>, vector<16x32xf32> -> vector<16x32xf32>
    %41 = vector.shape_cast %40 : vector<16x32xf32> to vector<2x8x32xf32>
    %42 = vector.shape_cast %8 : vector<1x32xf32> to vector<1x1x32xf32>
    %43 = vector.broadcast %42 : vector<1x1x32xf32> to vector<2x8x32xf32>
    %44 = arith.addf %41, %43 : vector<2x8x32xf32>
    %45 = arith.addf %0, %44 : vector<2x8x32xf32>
    %c0_19 = arith.constant 0 : index
    %c0_20 = arith.constant 0 : index
    %c0_21 = arith.constant 0 : index
    %46 = vector.load %arg9[%c0_19, %c0_20, %c0_21] : memref<2x1x32xf32, #tpu.memory_space<vmem>>, vector<1x1x32xf32>
    %47 = vector.shape_cast %46 : vector<1x1x32xf32> to vector<1x32xf32>
    %c0_22 = arith.constant 0 : index
    %c0_23 = arith.constant 0 : index
    %c0_24 = arith.constant 0 : index
    %48 = vector.load %arg10[%c0_22, %c0_23, %c0_24] : memref<2x1x32xf32, #tpu.memory_space<vmem>>, vector<1x1x32xf32>
    %49 = vector.shape_cast %48 : vector<1x1x32xf32> to vector<1x32xf32>
    %cst_25 = arith.constant dense<0.000000e+00> : vector<2x8xf32>
    %50 = vector.multi_reduction <add>, %45, %cst_25 [2] : vector<2x8x32xf32> to vector<2x8xf32>
    %51 = vector.shape_cast %50 : vector<2x8xf32> to vector<2x8x1xf32>
    %cst_26 = arith.constant 3.200000e+01 : f32
    %52 = vector.broadcast %cst_26 : f32 to vector<2x8x1xf32>
    %53 = arith.divf %51, %52 : vector<2x8x1xf32>
    %54 = vector.broadcast %53 : vector<2x8x1xf32> to vector<2x8x32xf32>
    %55 = arith.subf %45, %54 : vector<2x8x32xf32>
    %56 = arith.mulf %55, %55 : vector<2x8x32xf32>
    %cst_27 = arith.constant dense<0.000000e+00> : vector<2x8xf32>
    %57 = vector.multi_reduction <add>, %56, %cst_27 [2] : vector<2x8x32xf32> to vector<2x8xf32>
    %58 = vector.shape_cast %57 : vector<2x8xf32> to vector<2x8x1xf32>
    %cst_28 = arith.constant 3.200000e+01 : f32
    %59 = vector.broadcast %cst_28 : f32 to vector<2x8x1xf32>
    %60 = arith.divf %58, %59 : vector<2x8x1xf32>
    %61 = vector.broadcast %53 : vector<2x8x1xf32> to vector<2x8x32xf32>
    %62 = arith.subf %45, %61 : vector<2x8x32xf32>
    %cst_29 = arith.constant 9.99999974E-6 : f32
    %63 = vector.broadcast %cst_29 : f32 to vector<2x8x1xf32>
    %64 = arith.addf %60, %63 : vector<2x8x1xf32>
    %65 = math.rsqrt %64 : vector<2x8x1xf32>
    %66 = vector.broadcast %65 : vector<2x8x1xf32> to vector<2x8x32xf32>
    %67 = arith.mulf %62, %66 : vector<2x8x32xf32>
    %68 = vector.shape_cast %47 : vector<1x32xf32> to vector<1x1x32xf32>
    %69 = vector.broadcast %68 : vector<1x1x32xf32> to vector<2x8x32xf32>
    %70 = arith.mulf %67, %69 : vector<2x8x32xf32>
    %71 = vector.shape_cast %49 : vector<1x32xf32> to vector<1x1x32xf32>
    %72 = vector.broadcast %71 : vector<1x1x32xf32> to vector<2x8x32xf32>
    %73 = arith.addf %70, %72 : vector<2x8x32xf32>
    %c0_30 = arith.constant 0 : index
    %c0_31 = arith.constant 0 : index
    %c0_32 = arith.constant 0 : index
    %74 = vector.load %arg5[%c0_30, %c0_31, %c0_32] : memref<2x32x64xf32, #tpu.memory_space<vmem>>, vector<1x32x64xf32>
    %75 = vector.shape_cast %74 : vector<1x32x64xf32> to vector<32x64xf32>
    %c0_33 = arith.constant 0 : index
    %c0_34 = arith.constant 0 : index
    %c0_35 = arith.constant 0 : index
    %76 = vector.load %arg6[%c0_33, %c0_34, %c0_35] : memref<2x1x64xf32, #tpu.memory_space<vmem>>, vector<1x1x64xf32>
    %77 = vector.shape_cast %76 : vector<1x1x64xf32> to vector<1x64xf32>
    %78 = vector.shape_cast %73 : vector<2x8x32xf32> to vector<16x32xf32>
    %cst_36 = arith.constant dense<0.000000e+00> : vector<16x64xf32>
    %79 = tpu.matmul %78, %75, %cst_36 {dimension_numbers = #tpu.dot_dimension_numbers<[1], [0], [0], [1], [0, 0, 1, 1], [], []>} : vector<16x32xf32>, vector<32x64xf32>, vector<16x64xf32> -> vector<16x64xf32>
    %80 = vector.shape_cast %79 : vector<16x64xf32> to vector<2x8x64xf32>
    %81 = vector.shape_cast %77 : vector<1x64xf32> to vector<1x1x64xf32>
    %82 = vector.broadcast %81 : vector<1x1x64xf32> to vector<2x8x64xf32>
    %83 = arith.addf %80, %82 : vector<2x8x64xf32>
    %cst_37 = arith.constant 0.000000e+00 : f32
    %84 = vector.broadcast %cst_37 : f32 to vector<2x8x64xf32>
    %85 = arith.maximumf %83, %84 : vector<2x8x64xf32>
    %c0_38 = arith.constant 0 : index
    %c0_39 = arith.constant 0 : index
    %c0_40 = arith.constant 0 : index
    %86 = vector.load %arg7[%c0_38, %c0_39, %c0_40] : memref<2x64x32xf32, #tpu.memory_space<vmem>>, vector<1x64x32xf32>
    %87 = vector.shape_cast %86 : vector<1x64x32xf32> to vector<64x32xf32>
    %c0_41 = arith.constant 0 : index
    %c0_42 = arith.constant 0 : index
    %c0_43 = arith.constant 0 : index
    %88 = vector.load %arg8[%c0_41, %c0_42, %c0_43] : memref<2x1x32xf32, #tpu.memory_space<vmem>>, vector<1x1x32xf32>
    %89 = vector.shape_cast %88 : vector<1x1x32xf32> to vector<1x32xf32>
    %90 = vector.shape_cast %85 : vector<2x8x64xf32> to vector<16x64xf32>
    %cst_44 = arith.constant dense<0.000000e+00> : vector<16x32xf32>
    %91 = tpu.matmul %90, %87, %cst_44 {dimension_numbers = #tpu.dot_dimension_numbers<[1], [0], [0], [1], [0, 0, 1, 1], [], []>} : vector<16x64xf32>, vector<64x32xf32>, vector<16x32xf32> -> vector<16x32xf32>
    %92 = vector.shape_cast %91 : vector<16x32xf32> to vector<2x8x32xf32>
    %93 = vector.shape_cast %89 : vector<1x32xf32> to vector<1x1x32xf32>
    %94 = vector.broadcast %93 : vector<1x1x32xf32> to vector<2x8x32xf32>
    %95 = arith.addf %92, %94 : vector<2x8x32xf32>
    %96 = arith.addf %73, %95 : vector<2x8x32xf32>
    %c0_45 = arith.constant 0 : index
    %c0_46 = arith.constant 0 : index
    %c0_47 = arith.constant 0 : index
    %97 = vector.load %arg11[%c0_45, %c0_46, %c0_47] : memref<2x1x32xf32, #tpu.memory_space<vmem>>, vector<1x1x32xf32>
    %98 = vector.shape_cast %97 : vector<1x1x32xf32> to vector<1x32xf32>
    %c0_48 = arith.constant 0 : index
    %c0_49 = arith.constant 0 : index
    %c0_50 = arith.constant 0 : index
    %99 = vector.load %arg12[%c0_48, %c0_49, %c0_50] : memref<2x1x32xf32, #tpu.memory_space<vmem>>, vector<1x1x32xf32>
    %100 = vector.shape_cast %99 : vector<1x1x32xf32> to vector<1x32xf32>
    %cst_51 = arith.constant dense<0.000000e+00> : vector<2x8xf32>
    %101 = vector.multi_reduction <add>, %96, %cst_51 [2] : vector<2x8x32xf32> to vector<2x8xf32>
    %102 = vector.shape_cast %101 : vector<2x8xf32> to vector<2x8x1xf32>
    %cst_52 = arith.constant 3.200000e+01 : f32
    %103 = vector.broadcast %cst_52 : f32 to vector<2x8x1xf32>
    %104 = arith.divf %102, %103 : vector<2x8x1xf32>
    %105 = vector.broadcast %104 : vector<2x8x1xf32> to vector<2x8x32xf32>
    %106 = arith.subf %96, %105 : vector<2x8x32xf32>
    %107 = arith.mulf %106, %106 : vector<2x8x32xf32>
    %cst_53 = arith.constant dense<0.000000e+00> : vector<2x8xf32>
    %108 = vector.multi_reduction <add>, %107, %cst_53 [2] : vector<2x8x32xf32> to vector<2x8xf32>
    %109 = vector.shape_cast %108 : vector<2x8xf32> to vector<2x8x1xf32>
    %cst_54 = arith.constant 3.200000e+01 : f32
    %110 = vector.broadcast %cst_54 : f32 to vector<2x8x1xf32>
    %111 = arith.divf %109, %110 : vector<2x8x1xf32>
    %112 = vector.broadcast %104 : vector<2x8x1xf32> to vector<2x8x32xf32>
    %113 = arith.subf %96, %112 : vector<2x8x32xf32>
    %cst_55 = arith.constant 9.99999974E-6 : f32
    %114 = vector.broadcast %cst_55 : f32 to vector<2x8x1xf32>
    %115 = arith.addf %111, %114 : vector<2x8x1xf32>
    %116 = math.rsqrt %115 : vector<2x8x1xf32>
    %117 = vector.broadcast %116 : vector<2x8x1xf32> to vector<2x8x32xf32>
    %118 = arith.mulf %113, %117 : vector<2x8x32xf32>
    %119 = vector.shape_cast %98 : vector<1x32xf32> to vector<1x1x32xf32>
    %120 = vector.broadcast %119 : vector<1x1x32xf32> to vector<2x8x32xf32>
    %121 = arith.mulf %118, %120 : vector<2x8x32xf32>
    %122 = vector.shape_cast %100 : vector<1x32xf32> to vector<1x1x32xf32>
    %123 = vector.broadcast %122 : vector<1x1x32xf32> to vector<2x8x32xf32>
    %124 = arith.addf %121, %123 : vector<2x8x32xf32>
    %c1 = arith.constant 1 : index
    %c0_56 = arith.constant 0 : index
    %c0_57 = arith.constant 0 : index
    %125 = vector.load %arg1[%c1, %c0_56, %c0_57] : memref<2x32x96xf32, #tpu.memory_space<vmem>>, vector<1x32x96xf32>
    %126 = vector.shape_cast %125 : vector<1x32x96xf32> to vector<32x96xf32>
    %c1_58 = arith.constant 1 : index
    %c0_59 = arith.constant 0 : index
    %c0_60 = arith.constant 0 : index
    %127 = vector.load %arg2[%c1_58, %c0_59, %c0_60] : memref<2x1x96xf32, #tpu.memory_space<vmem>>, vector<1x1x96xf32>
    %128 = vector.shape_cast %127 : vector<1x1x96xf32> to vector<1x96xf32>
    %c1_61 = arith.constant 1 : index
    %c0_62 = arith.constant 0 : index
    %c0_63 = arith.constant 0 : index
    %129 = vector.load %arg3[%c1_61, %c0_62, %c0_63] : memref<2x32x32xf32, #tpu.memory_space<vmem>>, vector<1x32x32xf32>
    %130 = vector.shape_cast %129 : vector<1x32x32xf32> to vector<32x32xf32>
    %c1_64 = arith.constant 1 : index
    %c0_65 = arith.constant 0 : index
    %c0_66 = arith.constant 0 : index
    %131 = vector.load %arg4[%c1_64, %c0_65, %c0_66] : memref<2x1x32xf32, #tpu.memory_space<vmem>>, vector<1x1x32xf32>
    %132 = vector.shape_cast %131 : vector<1x1x32xf32> to vector<1x32xf32>
    %133 = vector.shape_cast %124 : vector<2x8x32xf32> to vector<16x32xf32>
    %cst_67 = arith.constant dense<0.000000e+00> : vector<16x96xf32>
    %134 = tpu.matmul %133, %126, %cst_67 {dimension_numbers = #tpu.dot_dimension_numbers<[1], [0], [0], [1], [0, 0, 1, 1], [], []>} : vector<16x32xf32>, vector<32x96xf32>, vector<16x96xf32> -> vector<16x96xf32>
    %135 = vector.shape_cast %134 : vector<16x96xf32> to vector<2x8x96xf32>
    %136 = vector.shape_cast %128 : vector<1x96xf32> to vector<1x1x96xf32>
    %137 = vector.broadcast %136 : vector<1x1x96xf32> to vector<2x8x96xf32>
    %138 = arith.addf %135, %137 : vector<2x8x96xf32>
    %139 = vector.extract_strided_slice %138 {offsets = [0, 0, 0], sizes = [2, 8, 16], strides = [1, 1, 1]} : vector<2x8x96xf32> to vector<2x8x16xf32>
    %140 = vector.extract_strided_slice %138 {offsets = [0, 0, 16], sizes = [2, 8, 16], strides = [1, 1, 1]} : vector<2x8x96xf32> to vector<2x8x16xf32>
    %141 = tpu.concatenate %139, %140 in 0 : vector<2x8x16xf32>, vector<2x8x16xf32> -> vector<4x8x16xf32>
    %142 = vector.extract_strided_slice %138 {offsets = [0, 0, 32], sizes = [2, 8, 16], strides = [1, 1, 1]} : vector<2x8x96xf32> to vector<2x8x16xf32>
    %143 = vector.extract_strided_slice %138 {offsets = [0, 0, 48], sizes = [2, 8, 16], strides = [1, 1, 1]} : vector<2x8x96xf32> to vector<2x8x16xf32>
    %144 = tpu.concatenate %142, %143 in 0 : vector<2x8x16xf32>, vector<2x8x16xf32> -> vector<4x8x16xf32>
    %145 = vector.extract_strided_slice %138 {offsets = [0, 0, 64], sizes = [2, 8, 16], strides = [1, 1, 1]} : vector<2x8x96xf32> to vector<2x8x16xf32>
    %146 = vector.extract_strided_slice %138 {offsets = [0, 0, 80], sizes = [2, 8, 16], strides = [1, 1, 1]} : vector<2x8x96xf32> to vector<2x8x16xf32>
    %147 = tpu.concatenate %145, %146 in 0 : vector<2x8x16xf32>, vector<2x8x16xf32> -> vector<4x8x16xf32>
    "tpu.trace_start"() <{level = 10 : i32, message = "bqd,bkd->bqk"}> : () -> ()
    %cst_68 = arith.constant dense<0.000000e+00> : vector<4x8x8xf32>
    %148 = tpu.matmul %141, %144, %cst_68 {dimension_numbers = #tpu.dot_dimension_numbers<[2], [2], [1], [1], [0, 0, 0, 1, 1, 1], [0], [0]>} : vector<4x8x16xf32>, vector<4x8x16xf32>, vector<4x8x8xf32> -> vector<4x8x8xf32>
    "tpu.trace_stop"() : () -> ()
    %cst_69 = arith.constant dense<0xFF800000> : vector<4x8xf32>
    %149 = vector.multi_reduction <maximumf>, %148, %cst_69 [2] : vector<4x8x8xf32> to vector<4x8xf32>
    %150 = vector.shape_cast %149 : vector<4x8xf32> to vector<4x8x1xf32>
    %151 = vector.broadcast %150 : vector<4x8x1xf32> to vector<4x8x8xf32>
    %152 = arith.subf %148, %151 : vector<4x8x8xf32>
    %153 = math.exp %152 : vector<4x8x8xf32>
    %cst_70 = arith.constant dense<0.000000e+00> : vector<4x8xf32>
    %154 = vector.multi_reduction <add>, %153, %cst_70 [2] : vector<4x8x8xf32> to vector<4x8xf32>
    %155 = vector.shape_cast %154 : vector<4x8xf32> to vector<4x8x1xf32>
    %156 = tpu.reciprocal %155 {approx = true} : vector<4x8x1xf32> -> vector<4x8x1xf32>
    %157 = vector.broadcast %156 : vector<4x8x1xf32> to vector<4x8x8xf32>
    %158 = arith.mulf %153, %157 : vector<4x8x8xf32>
    "tpu.trace_start"() <{level = 10 : i32, message = "bqk,bkd->bqd"}> : () -> ()
    %cst_71 = arith.constant dense<0.000000e+00> : vector<4x8x16xf32>
    %159 = tpu.matmul %158, %147, %cst_71 {dimension_numbers = #tpu.dot_dimension_numbers<[2], [1], [1], [2], [0, 0, 0, 1, 1, 2], [0], [0]>} : vector<4x8x8xf32>, vector<4x8x16xf32>, vector<4x8x16xf32> -> vector<4x8x16xf32>
    "tpu.trace_stop"() : () -> ()
    %160 = vector.extract_strided_slice %159 {offsets = [0, 0, 0], sizes = [2, 8, 16], strides = [1, 1, 1]} : vector<4x8x16xf32> to vector<2x8x16xf32>
    %161 = vector.extract_strided_slice %159 {offsets = [2, 0, 0], sizes = [2, 8, 16], strides = [1, 1, 1]} : vector<4x8x16xf32> to vector<2x8x16xf32>
    %162 = tpu.concatenate %160, %161 in 2 : vector<2x8x16xf32>, vector<2x8x16xf32> -> vector<2x8x32xf32>
    %163 = vector.shape_cast %162 : vector<2x8x32xf32> to vector<16x32xf32>
    %cst_72 = arith.constant dense<0.000000e+00> : vector<16x32xf32>
    %164 = tpu.matmul %163, %130, %cst_72 {dimension_numbers = #tpu.dot_dimension_numbers<[1], [0], [0], [1], [0, 0, 1, 1], [], []>} : vector<16x32xf32>, vector<32x32xf32>, vector<16x32xf32> -> vector<16x32xf32>
    %165 = vector.shape_cast %164 : vector<16x32xf32> to vector<2x8x32xf32>
    %166 = vector.shape_cast %132 : vector<1x32xf32> to vector<1x1x32xf32>
    %167 = vector.broadcast %166 : vector<1x1x32xf32> to vector<2x8x32xf32>
    %168 = arith.addf %165, %167 : vector<2x8x32xf32>
    %169 = arith.addf %124, %168 : vector<2x8x32xf32>
    %c1_73 = arith.constant 1 : index
    %c0_74 = arith.constant 0 : index
    %c0_75 = arith.constant 0 : index
    %170 = vector.load %arg9[%c1_73, %c0_74, %c0_75] : memref<2x1x32xf32, #tpu.memory_space<vmem>>, vector<1x1x32xf32>
    %171 = vector.shape_cast %170 : vector<1x1x32xf32> to vector<1x32xf32>
    %c1_76 = arith.constant 1 : index
    %c0_77 = arith.constant 0 : index
    %c0_78 = arith.constant 0 : index
    %172 = vector.load %arg10[%c1_76, %c0_77, %c0_78] : memref<2x1x32xf32, #tpu.memory_space<vmem>>, vector<1x1x32xf32>
    %173 = vector.shape_cast %172 : vector<1x1x32xf32> to vector<1x32xf32>
    %cst_79 = arith.constant dense<0.000000e+00> : vector<2x8xf32>
    %174 = vector.multi_reduction <add>, %169, %cst_79 [2] : vector<2x8x32xf32> to vector<2x8xf32>
    %175 = vector.shape_cast %174 : vector<2x8xf32> to vector<2x8x1xf32>
    %cst_80 = arith.constant 3.200000e+01 : f32
    %176 = vector.broadcast %cst_80 : f32 to vector<2x8x1xf32>
    %177 = arith.divf %175, %176 : vector<2x8x1xf32>
    %178 = vector.broadcast %177 : vector<2x8x1xf32> to vector<2x8x32xf32>
    %179 = arith.subf %169, %178 : vector<2x8x32xf32>
    %180 = arith.mulf %179, %179 : vector<2x8x32xf32>
    %cst_81 = arith.constant dense<0.000000e+00> : vector<2x8xf32>
    %181 = vector.multi_reduction <add>, %180, %cst_81 [2] : vector<2x8x32xf32> to vector<2x8xf32>
    %182 = vector.shape_cast %181 : vector<2x8xf32> to vector<2x8x1xf32>
    %cst_82 = arith.constant 3.200000e+01 : f32
    %183 = vector.broadcast %cst_82 : f32 to vector<2x8x1xf32>
    %184 = arith.divf %182, %183 : vector<2x8x1xf32>
    %185 = vector.broadcast %177 : vector<2x8x1xf32> to vector<2x8x32xf32>
    %186 = arith.subf %169, %185 : vector<2x8x32xf32>
    %cst_83 = arith.constant 9.99999974E-6 : f32
    %187 = vector.broadcast %cst_83 : f32 to vector<2x8x1xf32>
    %188 = arith.addf %184, %187 : vector<2x8x1xf32>
    %189 = math.rsqrt %188 : vector<2x8x1xf32>
    %190 = vector.broadcast %189 : vector<2x8x1xf32> to vector<2x8x32xf32>
    %191 = arith.mulf %186, %190 : vector<2x8x32xf32>
    %192 = vector.shape_cast %171 : vector<1x32xf32> to vector<1x1x32xf32>
    %193 = vector.broadcast %192 : vector<1x1x32xf32> to vector<2x8x32xf32>
    %194 = arith.mulf %191, %193 : vector<2x8x32xf32>
    %195 = vector.shape_cast %173 : vector<1x32xf32> to vector<1x1x32xf32>
    %196 = vector.broadcast %195 : vector<1x1x32xf32> to vector<2x8x32xf32>
    %197 = arith.addf %194, %196 : vector<2x8x32xf32>
    %c1_84 = arith.constant 1 : index
    %c0_85 = arith.constant 0 : index
    %c0_86 = arith.constant 0 : index
    %198 = vector.load %arg5[%c1_84, %c0_85, %c0_86] : memref<2x32x64xf32, #tpu.memory_space<vmem>>, vector<1x32x64xf32>
    %199 = vector.shape_cast %198 : vector<1x32x64xf32> to vector<32x64xf32>
    %c1_87 = arith.constant 1 : index
    %c0_88 = arith.constant 0 : index
    %c0_89 = arith.constant 0 : index
    %200 = vector.load %arg6[%c1_87, %c0_88, %c0_89] : memref<2x1x64xf32, #tpu.memory_space<vmem>>, vector<1x1x64xf32>
    %201 = vector.shape_cast %200 : vector<1x1x64xf32> to vector<1x64xf32>
    %202 = vector.shape_cast %197 : vector<2x8x32xf32> to vector<16x32xf32>
    %cst_90 = arith.constant dense<0.000000e+00> : vector<16x64xf32>
    %203 = tpu.matmul %202, %199, %cst_90 {dimension_numbers = #tpu.dot_dimension_numbers<[1], [0], [0], [1], [0, 0, 1, 1], [], []>} : vector<16x32xf32>, vector<32x64xf32>, vector<16x64xf32> -> vector<16x64xf32>
    %204 = vector.shape_cast %203 : vector<16x64xf32> to vector<2x8x64xf32>
    %205 = vector.shape_cast %201 : vector<1x64xf32> to vector<1x1x64xf32>
    %206 = vector.broadcast %205 : vector<1x1x64xf32> to vector<2x8x64xf32>
    %207 = arith.addf %204, %206 : vector<2x8x64xf32>
    %cst_91 = arith.constant 0.000000e+00 : f32
    %208 = vector.broadcast %cst_91 : f32 to vector<2x8x64xf32>
    %209 = arith.maximumf %207, %208 : vector<2x8x64xf32>
    %c1_92 = arith.constant 1 : index
    %c0_93 = arith.constant 0 : index
    %c0_94 = arith.constant 0 : index
    %210 = vector.load %arg7[%c1_92, %c0_93, %c0_94] : memref<2x64x32xf32, #tpu.memory_space<vmem>>, vector<1x64x32xf32>
    %211 = vector.shape_cast %210 : vector<1x64x32xf32> to vector<64x32xf32>
    %c1_95 = arith.constant 1 : index
    %c0_96 = arith.constant 0 : index
    %c0_97 = arith.constant 0 : index
    %212 = vector.load %arg8[%c1_95, %c0_96, %c0_97] : memref<2x1x32xf32, #tpu.memory_space<vmem>>, vector<1x1x32xf32>
    %213 = vector.shape_cast %212 : vector<1x1x32xf32> to vector<1x32xf32>
    %214 = vector.shape_cast %209 : vector<2x8x64xf32> to vector<16x64xf32>
    %cst_98 = arith.constant dense<0.000000e+00> : vector<16x32xf32>
    %215 = tpu.matmul %214, %211, %cst_98 {dimension_numbers = #tpu.dot_dimension_numbers<[1], [0], [0], [1], [0, 0, 1, 1], [], []>} : vector<16x64xf32>, vector<64x32xf32>, vector<16x32xf32> -> vector<16x32xf32>
    %216 = vector.shape_cast %215 : vector<16x32xf32> to vector<2x8x32xf32>
    %217 = vector.shape_cast %213 : vector<1x32xf32> to vector<1x1x32xf32>
    %218 = vector.broadcast %217 : vector<1x1x32xf32> to vector<2x8x32xf32>
    %219 = arith.addf %216, %218 : vector<2x8x32xf32>
    %220 = arith.addf %197, %219 : vector<2x8x32xf32>
    %c1_99 = arith.constant 1 : index
    %c0_100 = arith.constant 0 : index
    %c0_101 = arith.constant 0 : index
    %221 = vector.load %arg11[%c1_99, %c0_100, %c0_101] : memref<2x1x32xf32, #tpu.memory_space<vmem>>, vector<1x1x32xf32>
    %222 = vector.shape_cast %221 : vector<1x1x32xf32> to vector<1x32xf32>
    %c1_102 = arith.constant 1 : index
    %c0_103 = arith.constant 0 : index
    %c0_104 = arith.constant 0 : index
    %223 = vector.load %arg12[%c1_102, %c0_103, %c0_104] : memref<2x1x32xf32, #tpu.memory_space<vmem>>, vector<1x1x32xf32>
    %224 = vector.shape_cast %223 : vector<1x1x32xf32> to vector<1x32xf32>
    %cst_105 = arith.constant dense<0.000000e+00> : vector<2x8xf32>
    %225 = vector.multi_reduction <add>, %220, %cst_105 [2] : vector<2x8x32xf32> to vector<2x8xf32>
    %226 = vector.shape_cast %225 : vector<2x8xf32> to vector<2x8x1xf32>
    %cst_106 = arith.constant 3.200000e+01 : f32
    %227 = vector.broadcast %cst_106 : f32 to vector<2x8x1xf32>
    %228 = arith.divf %226, %227 : vector<2x8x1xf32>
    %229 = vector.broadcast %228 : vector<2x8x1xf32> to vector<2x8x32xf32>
    %230 = arith.subf %220, %229 : vector<2x8x32xf32>
    %231 = arith.mulf %230, %230 : vector<2x8x32xf32>
    %cst_107 = arith.constant dense<0.000000e+00> : vector<2x8xf32>
    %232 = vector.multi_reduction <add>, %231, %cst_107 [2] : vector<2x8x32xf32> to vector<2x8xf32>
    %233 = vector.shape_cast %232 : vector<2x8xf32> to vector<2x8x1xf32>
    %cst_108 = arith.constant 3.200000e+01 : f32
    %234 = vector.broadcast %cst_108 : f32 to vector<2x8x1xf32>
    %235 = arith.divf %233, %234 : vector<2x8x1xf32>
    %236 = vector.broadcast %228 : vector<2x8x1xf32> to vector<2x8x32xf32>
    %237 = arith.subf %220, %236 : vector<2x8x32xf32>
    %cst_109 = arith.constant 9.99999974E-6 : f32
    %238 = vector.broadcast %cst_109 : f32 to vector<2x8x1xf32>
    %239 = arith.addf %235, %238 : vector<2x8x1xf32>
    %240 = math.rsqrt %239 : vector<2x8x1xf32>
    %241 = vector.broadcast %240 : vector<2x8x1xf32> to vector<2x8x32xf32>
    %242 = arith.mulf %237, %241 : vector<2x8x32xf32>
    %243 = vector.shape_cast %222 : vector<1x32xf32> to vector<1x1x32xf32>
    %244 = vector.broadcast %243 : vector<1x1x32xf32> to vector<2x8x32xf32>
    %245 = arith.mulf %242, %244 : vector<2x8x32xf32>
    %246 = vector.shape_cast %224 : vector<1x32xf32> to vector<1x1x32xf32>
    %247 = vector.broadcast %246 : vector<1x1x32xf32> to vector<2x8x32xf32>
    %248 = arith.addf %245, %247 : vector<2x8x32xf32>
    %cst_110 = arith.constant dense<0xFF800000> : vector<2x32xf32>
    %249 = vector.multi_reduction <maximumf>, %248, %cst_110 [1] : vector<2x8x32xf32> to vector<2x32xf32>
    %c0_111 = arith.constant 0 : index
    %c0_112 = arith.constant 0 : index
    %250 = vector.load %arg13[%c0_111, %c0_112] : memref<32x64xf32, #tpu.memory_space<vmem>>, vector<32x64xf32>
    %c0_113 = arith.constant 0 : index
    %c0_114 = arith.constant 0 : index
    %251 = vector.load %arg14[%c0_113, %c0_114] : memref<1x64xf32, #tpu.memory_space<vmem>>, vector<1x64xf32>
    %cst_115 = arith.constant dense<0.000000e+00> : vector<2x64xf32>
    %252 = tpu.matmul %249, %250, %cst_115 {dimension_numbers = #tpu.dot_dimension_numbers<[1], [0], [0], [1], [0, 0, 1, 1], [], []>} : vector<2x32xf32>, vector<32x64xf32>, vector<2x64xf32> -> vector<2x64xf32>
    %253 = vector.broadcast %251 : vector<1x64xf32> to vector<2x64xf32>
    %254 = arith.addf %252, %253 : vector<2x64xf32>
    %c0_116 = arith.constant 0 : index
    %c0_117 = arith.constant 0 : index
    %255 = vector.load %arg15[%c0_116, %c0_117] : memref<2x64xf32, #tpu.memory_space<vmem>>, vector<2x64xf32>
    tpu.vector_store %arg15[%c0_116, %c0_117], %254 {strides = array<i32>} : memref<2x64xf32, #tpu.memory_space<vmem>>, vector<2x64xf32>,
    return
  }
}

</mosaic_0001>

<bundles_post_ra>
// kernel: pooling_transformer_encoder.1
= control target key start
LH: loop header
LB: loop body
LE: loop exit
PB: predicated region body
PF: predicated region fallthrough
CT: control target
= control target key end

     0   :  { %vm62_vm0 = vcmask 261120   ;;  %s1367_s17 = smov 112   ;;  %s1368_s18 = smov 96   ;;  %vm105_vm1 = vcmask 130048   ;;  %vm208_vm2 = vcmask 64512   ;;  %vm516_vm10 = vcmask 523264   ;;  %s1798_s1 = inlined_call_operand.vmem [shape: f32[2,32,96], index: 1, kind: input, shape index: {}]   ;;  %s1799_s2 = inlined_call_operand.vmem [shape: f32[2,1,96], index: 2, kind: input, shape index: {}]   ;;  %s1800_s0 = inlined_call_operand.vmem [shape: f32[2,8,32], index: 0, kind: input, shape index: {}]   ;;  %s1801_s3 = inlined_call_operand.vmem [shape: f32[2,32,32], index: 3, kind: input, shape index: {}]   ;;  %s1802_s4 = inlined_call_operand.vmem [shape: f32[2,1,32], index: 4, kind: input, shape index: {}]   ;;  %s1803_s9 = inlined_call_operand.vmem [shape: f32[2,1,32], index: 9, kind: input, shape index: {}]   ;;  %s1804_s10 = inlined_call_operand.vmem [shape: f32[2,1,32], index: 10, kind: input, shape index: {}]   ;;  %s1805_s6 = inlined_call_operand.vmem [shape: f32[2,1,64], index: 6, kind: input, shape index: {}]   ;;  %s1806_s5 = inlined_call_operand.vmem [shape: f32[2,32,64], index: 5, kind: input, shape index: {}]   ;;  %s1807_s7 = inlined_call_operand.vmem [shape: f32[2,64,32], index: 7, kind: input, shape index: {}]   ;;  %s1808_s8 = inlined_call_operand.vmem [shape: f32[2,1,32], index: 8, kind: input, shape index: {}]   ;;  %s1809_s11 = inlined_call_operand.vmem [shape: f32[2,1,32], index: 11, kind: input, shape index: {}]   ;;  %s1810_s12 = inlined_call_operand.vmem [shape: f32[2,1,32], index: 12, kind: input, shape index: {}]   ;;  %s1811_s14 = inlined_call_operand.vmem [shape: f32[1,64], index: 14, kind: input, shape index: {}]   ;;  %s1812_s13 = inlined_call_operand.vmem [shape: f32[32,64], index: 13, kind: input, shape index: {}]   ;;  %s1813_s15 = inlined_call_operand.vmem [shape: f32[2,64], index: 15, kind: output, shape index: {}]  }
   0x1   :  { %v55_v0 = vld [vmem:[%s1798_s1 + $0x18] sm:$0xff]  ;;  %v54_v1 = vld [vmem:[%s1798_s1 + $0x10] sm:$0xff]  ;;  %v53_v2 = vld [vmem:[%s1798_s1 + $0x8] sm:$0xff]  ;;  %s1370_s25 = smov 16  }
   0x2   :  { %81 = vmatpush.msra.mxu0 %v55_v0  ;;  %v52_v3 = vld [vmem:[%s1798_s1] sm:$0xff]  ;;  %v1474_v5 = vld [vmem:[%s1800_s0 + $0x8] sm:$0xff]  ;;  %v60_v63 = vld [vmem:[%s1801_s3 + $0x18] sm:$0xff] }
   0x3   :  { %v1467_v4 = vld [vmem:[%s1800_s0] sm:$0xff]  ;;  %s1369_s0 = smov 64   ;;  %v59_v0 = vld [vmem:[%s1801_s3 + $0x10] sm:$0xff] }
   0x4   :  { %82 = vmatpush.msra.mxu0 %v54_v1  ;;  %v1300_v6 = vld [vmem:[%s1799_s2] ss:$0 sm:$0xff]  ;;  %v58_v1 = vld [vmem:[%s1801_s3 + $0x8] sm:$0xff] }
   0x6   :  { %83 = vmatpush.msra.mxu0 %v53_v2 }
   0x8   :  { %84 = vmatpush.msra.mxu0 %v52_v3 }
   0x9   :  { %1221 = vmatmul.msk.f32.vlgmr.msra.gmra.mxu0 %vm62_vm0, %v1467_v4 }
  0x11   :  { %1222 = vmatmul.msk.f32.gmra.mxu0 %vm62_vm0, %v1474_v5 }
  0x86   :  { %v86_v7 = vpop.f32.mrf.mxu0 }
  0x87   :  { %v95_v8 = vadd.f32 %v1300_v6, %v86_v7  ;;  %v57_v7 = vld [vmem:[%s1801_s3] sm:$0xff] }
  0x89   :  { %99 = vrot.lane.b32.xlu0 %v95_v8, %s1367_s17 }
  0x8e   :  { %v89_v9 = vpop.f32.mrf.mxu0 }
  0x8f   :  { %v1482_v10 = vadd.f32 %v1300_v6, %v89_v9 }
  0x91   :  { %130 = vrot.lane.b32.xlu1 %v1482_v10, %s1368_s18  ;;  %101 = vrot.lane.b32.xlu0 %v1482_v10, %s1367_s17 }
  0x99   :  { %103 = vrot.lane.b32.xlu1 %v95_v8, %s1368_s18 }
  0xfb   :  { %v100_v11 = vpop.permute.xlu0 %99 }
  0xfc   :  { %156 = vrot.lane.b32.xlu2 %v100_v11, %s1368_s18 }
 0x103   :  { %v131_v12 = vpop.permute.xlu1 %130  ;;  %v102_v13 = vpop.permute.xlu0 %101 }
 0x104   :  { %1225 = vmatpush.xpose.msk.msra.mxu3 %vm105_vm1, %v131_v12  ;;  %182 = vrot.lane.b32.xlu2 %v102_v13, %s1368_s18  ;;  %v1295_v45 = vpack.i.bf16 %v102_v13, %v100_v11 }
 0x107   :  { %1226 = vmatmul.msk.f32.vlgmr.msra.gmra.mxu3 %vm105_vm1, %v1482_v10 }
 0x10b   :  { %v104_v14 = vpop.permute.xlu1 %103 }
 0x10c   :  { %1223 = vmatpush.xpose.msk.msra.mxu1 %vm105_vm1, %v104_v14 }
 0x10f   :  { %1224 = vmatmul.msk.f32.vlgmr.msra.gmra.mxu1 %vm105_vm1, %v95_v8 }
 0x156   :  { %v157_v15 = vpop.permute.xlu2 %156 }
 0x157   :  { %1227 = vmatpush.xpose.msk.msrb.mxu3 %vm105_vm1, %v157_v15 }
 0x15a   :  { %1228 = vmatmul.msk.f32.vlgmr.msrb.gmra.mxu3 %vm105_vm1, %v100_v11 }
 0x15e   :  { %v183_v16 = vpop.permute.xlu2 %182 }
 0x15f   :  { %1229 = vmatpush.xpose.msk.msrb.mxu1 %vm105_vm1, %v183_v16 }
 0x162   :  { %1230 = vmatmul.msk.f32.vlgmr.msrb.gmra.mxu1 %vm105_vm1, %v102_v13  ;;  %v1301_v13 = vld [vmem:[%s1802_s4] ss:$0 sm:$0xff] }
 0x18a   :  { %v153_v19 = vpop.f32.mrf.mxu3 }
 0x18b   :  { %v212_v24 = vsel %vm208_vm2, %v153_v19, -inf }
 0x18c   :  { %v127_v17 = vpop.f32.mrf.mxu1 }
 0x18d   :  { %v209_v18 = vsel %vm208_vm2, %v127_v17, -inf }
 0x18e   :  { %210 = vmax.xlane.f32.xlu0 %v209_v18 }
 0x1dd   :  { %v179_v20 = vpop.f32.mrf.mxu3 }
 0x1de   :  { %v215_v21 = vsel %vm208_vm2, %v179_v20, -inf }
 0x1df   :  { %216 = vmax.xlane.f32.xlu1 %v215_v21  ;;  %v205_v22 = vpop.f32.mrf.mxu1 }
 0x1e0   :  { %v218_v23 = vsel %vm208_vm2, %v205_v22, -inf }
 0x1e1   :  { %219 = vmax.xlane.f32.xlu2 %v218_v23 }
 0x1e9   :  { %213 = vmax.xlane.f32.xlu2 %v212_v24 }
 0x201   :  { %v211_v25 = vpop.xlane.xlu0 %210 }
 0x202   :  { %v221_v26 = vsub.f32 %v127_v17, %v211_v25 }
 0x204   :  { %v225_v27 = vmul.f32 1.442695, %v221_v26 }
 0x206   :  { %1317 = vpow2.f32 %v225_v27 }
 0x20c   :  { %v1318_v28 = vpop.eup %1317 }
 0x20d   :  { %v233_v29 = vsel %vm208_vm2, %v1318_v28, 0.0 }
 0x20e   :  { %234 = vadd.xlane.f32.xlu0 %v233_v29 }
 0x222   :  { %253 = vrot.lane.b32.xlu0 %v95_v8, %s1369_s0 }
 0x252   :  { %v217_v30 = vpop.xlane.xlu1 %216 }
 0x253   :  { %v223_v31 = vsub.f32 %v179_v20, %v217_v30 }
 0x254   :  { %v220_v32 = vpop.xlane.xlu2 %219 }
 0x255   :  { %v229_v33 = vmul.f32 1.442695, %v223_v31  ;;  %v224_v34 = vsub.f32 %v205_v22, %v220_v32  ;;  %v1371_v22 = vmov 32.0  }
 0x257   :  { %1319 = vpow2.f32 %v229_v33  ;;  %v231_v35 = vmul.f32 1.442695, %v224_v34 }
 0x259   :  { %1321 = vpow2.f32 %v231_v35 }
 0x25c   :  { %v214_v36 = vpop.xlane.xlu2 %213 }
 0x25d   :  { %v1320_v37 = vpop.eup %1319  ;;  %v222_v38 = vsub.f32 %v153_v19, %v214_v36 }
 0x25e   :  { %v239_v39 = vsel %vm208_vm2, %v1320_v37, 0.0 }
 0x25f   :  { %v1322_v40 = vpop.eup %1321  ;;  %v227_v41 = vmul.f32 1.442695, %v222_v38  ;;  %240 = vadd.xlane.f32.xlu1 %v239_v39  ;;  %v468_v38 = vld [vmem:[%s1806_s5 + $0x10] sm:$0xff]  ;;  %v467_v39 = vld [vmem:[%s1806_s5 + $0x8] sm:$0xff] }
 0x260   :  { %v242_v42 = vsel %vm208_vm2, %v1322_v40, 0.0 }
 0x261   :  { %1323 = vpow2.f32 %v227_v41  ;;  %243 = vadd.xlane.f32.xlu2 %v242_v42 }
 0x267   :  { %v1324_v43 = vpop.eup %1323 }
 0x268   :  { %v236_v44 = vsel %vm208_vm2, %v1324_v43, 0.0 }
 0x269   :  { %237 = vadd.xlane.f32.xlu2 %v236_v44  ;;  %v514_v44 = vld [vmem:[%s1807_s7 + $0x38] sm:$0xff] }
 0x278   :  { %1296 = vrot.lane.b32.xlu1 %v1295_v45, %s1369_s0  ;;  %v513_v45 = vld [vmem:[%s1807_s7 + $0x30] sm:$0xff] }
 0x281   :  { %279 = vrot.lane.b32.xlu2 %v1482_v10, %s1369_s0  ;;  %v235_v46 = vpop.xlane.xlu0 %234 }
 0x282   :  { %1325 = vrcp.f32 %v235_v46  ;;  %v512_v46 = vld [vmem:[%s1807_s7 + $0x28] sm:$0xff] }
 0x288   :  { %v1326_v47 = vpop.eup %1325 }
 0x289   :  { %v249_v49 = vmul.f32 %v1326_v47, %v1318_v28 }
 0x294   :  { %v254_v48 = vpop.permute.xlu0 %253 }
 0x295   :  { %274 = vmatpush.msra.mxu2 %v254_v48 }
 0x296   :  { %1231 = vmatmul.msk.f32.vlgmr.msra.gmra.mxu2 %vm208_vm2, %v249_v49  ;;  %v511_v49 = vld [vmem:[%s1807_s7 + $0x20] sm:$0xff] }
 0x2d2   :  { %v241_v52 = vpop.xlane.xlu1 %240 }
 0x2d4   :  { %v244_v50 = vpop.xlane.xlu2 %243 }
 0x2dc   :  { %v238_v51 = vpop.xlane.xlu2 %237 }
 0x2dd   :  { %1327 = vrcp.f32 %v238_v51 }
 0x2de   :  { %1329 = vrcp.f32 %v241_v52  ;;  %v510_v52 = vld [vmem:[%s1807_s7 + $0x18] sm:$0xff] }
 0x2df   :  { %1331 = vrcp.f32 %v244_v50 }
 0x2e0   :  { %1333 = vrcp.f32 %v1371_v22  ;;  %v1306_v22 = vld [vmem:[%s1808_s8] ss:$0 sm:$0xff] }
 0x2e3   :  { %v1328_v53 = vpop.eup %1327 }
 0x2e4   :  { %v250_v54 = vmul.f32 %v1328_v53, %v1324_v43  ;;  %v280_v55 = vpop.permute.xlu2 %279  ;;  %v1330_v56 = vpop.eup %1329 }
 0x2e5   :  { %300 = vmatpush.msra.mxu3 %v280_v55  ;;  %v1332_v57 = vpop.eup %1331  ;;  %v251_v61 = vmul.f32 %v1330_v56, %v1320_v37  ;;  %v469_v37 = vld [vmem:[%s1806_s5 + $0x18] sm:$0xff] }
 0x2e6   :  { %1232 = vmatmul.msk.f32.vlgmr.msra.gmra.mxu3 %vm208_vm2, %v250_v54  ;;  %v252_v62 = vmul.f32 %v1332_v57, %v1322_v40  ;;  %v1334_v23 = vpop.eup %1333  ;;  %489 = vmatpush.msrb.mxu0 %v469_v37  ;;  %v466_v40 = vld [vmem:[%s1806_s5] sm:$0xff] }
 0x2e7   :  { %385 = vmatpush.msrb.mxu3 %v60_v63  ;;  %v412_v24 = vmul.f32 32.0, %v1334_v23  ;;  %vm416_vm3 = vweird.f32 %v1334_v23 }
 0x2e8   :  { %490 = vmatpush.msrb.mxu0 %v468_v38 }
 0x2e9   :  { %386 = vmatpush.msrb.mxu3 %v59_v0  ;;  %v413_v25 = vsub.f32 1.0, %v412_v24  ;;  %v1303_v0 = vld [vmem:[%s1804_s10] ss:$0 sm:$0xff] }
 0x2ea   :  { %v1297_v58 = vpop.permute.xlu1 %1296  ;;  %491 = vmatpush.msrb.mxu0 %v467_v39 }
 0x2eb   :  { %v1298_v59 = vunpack.i.l.bf16 %v1297_v58  ;;  %v1299_v60 = vunpack.i.h.bf16 %v1297_v58  ;;  %387 = vmatpush.msrb.mxu3 %v58_v1  ;;  %v414_v26 = vmul.f32 %v1334_v23, %v413_v25 }
 0x2ec   :  { %492 = vmatpush.msrb.mxu0 %v466_v40  ;;  %v1244_v40 = vld [vmem:[%s1798_s1 + $0x38] sm:$0xff] }
 0x2ed   :  { %326 = vmatpush.msra.mxu1 %v1298_v59  ;;  %352 = vmatpush.msrb.mxu2 %v1299_v60  ;;  %v415_v27 = vadd.f32 %v1334_v23, %v414_v26  ;;  %v1302_v60 = vld [vmem:[%s1803_s9] ss:$0 sm:$0xff] }
 0x2ee   :  { %1233 = vmatmul.msk.f32.vlgmr.msra.gmra.mxu1 %vm208_vm2, %v251_v61  ;;  %1234 = vmatmul.msk.f32.vlgmr.msrb.gmra.mxu2 %vm208_vm2, %v252_v62 }
 0x2ef   :  { %388 = vmatpush.msrb.mxu3 %v57_v7  ;;  %v1541_v28 = vsel %vm416_vm3, %v1334_v23, %v415_v27  ;;  %531 = vmatpush.msrb.mxu1 %v514_v44 }
 0x2f0   :  { %641 = vmatpush.msra.mxu2 %v1244_v40 }
 0x2f1   :  { %532 = vmatpush.msrb.mxu1 %v513_v45 }
 0x2f3   :  { %533 = vmatpush.msrb.mxu1 %v512_v46 }
 0x2f5   :  { %534 = vmatpush.msrb.mxu1 %v511_v49 }
 0x2f7   :  { %535 = vmatpush.msrb.mxu1 %v510_v52 }
 0x319   :  { %v276_v2 = vpop.f32.mrf.mxu2 }
 0x369   :  { %v302_v11 = vpop.f32.mrf.mxu3 }
 0x36b   :  { %v328_v3 = vpop.f32.mrf.mxu1 }
 0x36c   :  { %359 = vrot.lane.b32.xlu0 %v328_v3, %s1370_s25 }
 0x371   :  { %v354_v6 = vpop.f32.mrf.mxu2 }
 0x372   :  { %361 = vrot.lane.b32.xlu1 %v354_v6, %s1370_s25 }
 0x3de   :  { %v360_v8 = vpop.permute.xlu0 %359 }
 0x3df   :  { %v365_v9 = vsel %vm105_vm1, %v276_v2, %v360_v8 }
 0x3e0   :  { %1235 = vmatmul.msk.f32.vlgmr.msrb.gmra.mxu3 %vm62_vm0, %v365_v9 }
 0x3e4   :  { %v362_v10 = vpop.permute.xlu1 %361 }
 0x3e5   :  { %v366_v12 = vsel %vm105_vm1, %v302_v11, %v362_v10 }
 0x3e8   :  { %1236 = vmatmul.msk.f32.gmra.mxu3 %vm62_vm0, %v366_v12  ;;  %v509_v12 = vld [vmem:[%s1807_s7 + $0x10] sm:$0xff] }
 0x3e9   :  { %536 = vmatpush.msrb.mxu1 %v509_v12 }
 0x463   :  { %v390_v14 = vpop.f32.mrf.mxu3 }
 0x464   :  { %v399_v15 = vadd.f32 %v1301_v13, %v390_v14  ;;  %v507_v14 = vld [vmem:[%s1807_s7] sm:$0xff] }
 0x466   :  { %v401_v16 = vadd.f32 %v399_v15, %v1467_v4  ;;  %v1305_v15 = vld [vmem:[%s1805_s6] ss:$0 sm:$0xff] }
 0x468   :  { %v405_v17 = vsel %vm62_vm0, %v401_v16, 0.0 }
 0x469   :  { %406 = vadd.xlane.f32.xlu0 %v405_v17 }
 0x46b   :  { %v393_v18 = vpop.f32.mrf.mxu3 }
 0x46c   :  { %v400_v19 = vadd.f32 %v1301_v13, %v393_v18  ;;  %v508_v13 = vld [vmem:[%s1807_s7 + $0x8] sm:$0xff] }
 0x46d   :  { %537 = vmatpush.msrb.mxu1 %v508_v13 }
 0x46e   :  { %v402_v20 = vadd.f32 %v400_v19, %v1474_v5 }
 0x46f   :  { %538 = vmatpush.msrb.mxu1 %v507_v14 }
 0x470   :  { %v408_v21 = vsel %vm62_vm0, %v402_v20, 0.0 }
 0x471   :  { %409 = vadd.xlane.f32.xlu1 %v408_v21 }
 0x4dc   :  { %v407_v4 = vpop.xlane.xlu0 %406 }
 0x4dd   :  { %v418_v29 = vmul.f32 %v1541_v28, %v407_v4 }
 0x4df   :  { %v420_v30 = vsub.f32 %v401_v16, %v418_v29 }
 0x4e1   :  { %v422_v31 = vmul.f32 %v420_v30, %v420_v30 }
 0x4e3   :  { %v424_v5 = vsel %vm62_vm0, %v422_v31, 0.0 }
 0x4e4   :  { %425 = vadd.xlane.f32.xlu2 %v424_v5  ;;  %v410_v32 = vpop.xlane.xlu1 %409 }
 0x4e5   :  { %v419_v33 = vmul.f32 %v1541_v28, %v410_v32 }
 0x4e7   :  { %v421_v34 = vsub.f32 %v402_v20, %v419_v33 }
 0x4e9   :  { %v423_v35 = vmul.f32 %v421_v34, %v421_v34 }
 0x4eb   :  { %v427_v36 = vsel %vm62_vm0, %v423_v35, 0.0 }
 0x4ec   :  { %428 = vadd.xlane.f32.xlu0 %v427_v36 }
 0x557   :  { %v426_v41 = vpop.xlane.xlu2 %425 }
 0x558   :  { %v430_v42 = vmul.f32 %v426_v41, %v1541_v28  ;;  %v1243_v41 = vld [vmem:[%s1798_s1 + $0x30] sm:$0xff] }
 0x559   :  { %642 = vmatpush.msra.mxu2 %v1243_v41 }
 0x55a   :  { %v432_v43 = vadd.f32 1e-05, %v430_v42  ;;  %v1242_v42 = vld [vmem:[%s1798_s1 + $0x28] sm:$0xff] }
 0x55b   :  { %643 = vmatpush.msra.mxu2 %v1242_v42 }
 0x55c   :  { %1335 = vrsqrt.f32 %v432_v43  ;;  %vm440_vm5 = vweird.f32 %v432_v43 }
 0x55f   :  { %v429_v47 = vpop.xlane.xlu0 %428 }
 0x560   :  { %v431_v48 = vmul.f32 %v429_v47, %v1541_v28 }
 0x562   :  { %v1336_v50 = vpop.eup %1335  ;;  %v433_v51 = vadd.f32 1e-05, %v431_v48 }
 0x563   :  { %v435_v53 = vmul.f32 %v1336_v50, %v432_v43  ;;  %vm441_vm4 = vweird.f32 %v1336_v50  ;;  %v1241_v43 = vld [vmem:[%s1798_s1 + $0x20] sm:$0xff] }
 0x564   :  { %1337 = vrsqrt.f32 %v433_v51  ;;  %vm442_vm6 = vmor %vm440_vm5, %vm441_vm4  ;;  %vm450_vm8 = vweird.f32 %v433_v51  ;;  %644 = vmatpush.msra.mxu2 %v1241_v43 }
 0x565   :  { %v436_v54 = vmul.f32 %v1336_v50, %v435_v53 }
 0x567   :  { %v437_v55 = vmul.f32 0.5, %v436_v54 }
 0x569   :  { %v438_v56 = vsub.f32 1.5, %v437_v55 }
 0x56a   :  { %v1338_v57 = vpop.eup %1337 }
 0x56b   :  { %v439_v58 = vmul.f32 %v1336_v50, %v438_v56  ;;  %v445_v59 = vmul.f32 %v1338_v57, %v433_v51  ;;  %vm451_vm7 = vweird.f32 %v1338_v57 }
 0x56c   :  { %vm452_vm9 = vmor %vm450_vm8, %vm451_vm7 }
 0x56d   :  { %v443_v61 = vsel %vm442_vm6, %v1336_v50, %v439_v58  ;;  %v446_v62 = vmul.f32 %v1338_v57, %v445_v59  ;;  %v1307_v58 = vld [vmem:[%s1809_s11] ss:$0 sm:$0xff] }
 0x56e   :  { %v454_v63 = vmul.f32 %v443_v61, %v420_v30 }
 0x56f   :  { %v447_v1 = vmul.f32 0.5, %v446_v62  ;;  %v1308_v62 = vld [vmem:[%s1810_s12] ss:$0 sm:$0xff] }
 0x570   :  { %v459_v2 = vmul.f32 %v1302_v60, %v454_v63 }
 0x571   :  { %v448_v3 = vsub.f32 1.5, %v447_v1 }
 0x572   :  { %v464_v6 = vadd.f32 %v1303_v0, %v459_v2 }
 0x573   :  { %v449_v7 = vmul.f32 %v1338_v57, %v448_v3 }
 0x574   :  { %1237 = vmatmul.msk.f32.vlgmr.msrb.gmra.mxu0 %vm62_vm0, %v464_v6 }
 0x575   :  { %v453_v8 = vsel %vm452_vm9, %v1338_v57, %v449_v7 }
 0x576   :  { %v455_v9 = vmul.f32 %v453_v8, %v421_v34 }
 0x578   :  { %v460_v10 = vmul.f32 %v1302_v60, %v455_v9 }
 0x57a   :  { %v465_v11 = vadd.f32 %v1303_v0, %v460_v10  ;;  %v1309_v10 = vld [vmem:[%s1799_s2 + $0x1] ss:$0 sm:$0xff] }
 0x57c   :  { %1238 = vmatmul.msk.f32.gmra.mxu0 %vm62_vm0, %v465_v11 }
 0x5f1   :  { %v494_v16 = vpop.f32.mrf.mxu0 }
 0x5f2   :  { %v503_v17 = vadd.f32 %v1305_v15, %v494_v16 }
 0x5f4   :  { %v505_v18 = vmax.f32 %v503_v17, 0.0 }
 0x5f6   :  { %1239 = vmatmul.msk.f32.vlgmr.msrb.gmra.mxu1 %vm516_vm10, %v505_v18 }
 0x5f9   :  { %v497_v19 = vpop.f32.mrf.mxu0 }
 0x5fa   :  { %v504_v20 = vadd.f32 %v1305_v15, %v497_v19 }
 0x5fc   :  { %v506_v21 = vmax.f32 %v504_v20, 0.0 }
 0x5fe   :  { %1240 = vmatmul.msk.f32.gmra.mxu1 %vm516_vm10, %v506_v21 }
 0x673   :  { %v540_v23 = vpop.f32.mrf.mxu1 }
 0x674   :  { %v549_v24 = vadd.f32 %v1306_v22, %v540_v23 }
 0x676   :  { %v551_v25 = vadd.f32 %v549_v24, %v464_v6 }
 0x678   :  { %v555_v26 = vsel %vm62_vm0, %v551_v25, 0.0 }
 0x679   :  { %556 = vadd.xlane.f32.xlu1 %v555_v26 }
 0x67b   :  { %v543_v27 = vpop.f32.mrf.mxu1 }
 0x67c   :  { %v550_v4 = vadd.f32 %v1306_v22, %v543_v27 }
 0x67e   :  { %v552_v29 = vadd.f32 %v550_v4, %v465_v11 }
 0x680   :  { %v558_v30 = vsel %vm62_vm0, %v552_v29, 0.0 }
 0x681   :  { %559 = vadd.xlane.f32.xlu0 %v558_v30 }
 0x6ec   :  { %v557_v31 = vpop.xlane.xlu1 %556 }
 0x6ed   :  { %v561_v5 = vmul.f32 %v557_v31, %v1541_v28 }
 0x6ef   :  { %v563_v32 = vsub.f32 %v551_v25, %v561_v5 }
 0x6f1   :  { %v565_v33 = vmul.f32 %v563_v32, %v563_v32 }
 0x6f3   :  { %v567_v34 = vsel %vm62_vm0, %v565_v33, 0.0 }
 0x6f4   :  { %v560_v35 = vpop.xlane.xlu0 %559  ;;  %568 = vadd.xlane.f32.xlu2 %v567_v34 }
 0x6f5   :  { %v562_v36 = vmul.f32 %v560_v35, %v1541_v28 }
 0x6f7   :  { %v564_v37 = vsub.f32 %v552_v29, %v562_v36 }
 0x6f9   :  { %v566_v38 = vmul.f32 %v564_v37, %v564_v37 }
 0x6fb   :  { %v570_v39 = vsel %vm62_vm0, %v566_v38, 0.0 }
 0x6fc   :  { %571 = vadd.xlane.f32.xlu1 %v570_v39 }
 0x767   :  { %v569_v44 = vpop.xlane.xlu2 %568 }
 0x768   :  { %v573_v45 = vmul.f32 %v569_v44, %v1541_v28 }
 0x76a   :  { %v575_v46 = vadd.f32 1e-05, %v573_v45 }
 0x76c   :  { %1339 = vrsqrt.f32 %v575_v46  ;;  %vm583_vm12 = vweird.f32 %v575_v46 }
 0x76f   :  { %v572_v47 = vpop.xlane.xlu1 %571 }
 0x770   :  { %v574_v48 = vmul.f32 %v572_v47, %v1541_v28 }
 0x772   :  { %v1340_v49 = vpop.eup %1339  ;;  %v576_v50 = vadd.f32 1e-05, %v574_v48 }
 0x773   :  { %v578_v51 = vmul.f32 %v1340_v49, %v575_v46  ;;  %vm584_vm11 = vweird.f32 %v1340_v49 }
 0x774   :  { %1341 = vrsqrt.f32 %v576_v50  ;;  %vm585_vm13 = vmor %vm583_vm12, %vm584_vm11  ;;  %vm593_vm15 = vweird.f32 %v576_v50 }
 0x775   :  { %v579_v52 = vmul.f32 %v1340_v49, %v578_v51 }
 0x777   :  { %v580_v53 = vmul.f32 0.5, %v579_v52 }
 0x779   :  { %v581_v54 = vsub.f32 1.5, %v580_v53 }
 0x77a   :  { %v1342_v55 = vpop.eup %1341 }
 0x77b   :  { %v582_v56 = vmul.f32 %v1340_v49, %v581_v54  ;;  %v588_v57 = vmul.f32 %v1342_v55, %v576_v50  ;;  %vm594_vm14 = vweird.f32 %v1342_v55 }
 0x77c   :  { %vm595_vm3 = vmor %vm593_vm15, %vm594_vm14  ;;  %vm1191_vm14 = vcmask 1041409   ;;  %vm1215_vm15 = vcmask 517120  }
 0x77d   :  { %v586_v59 = vsel %vm585_vm13, %v1340_v49, %v582_v56  ;;  %v589_v60 = vmul.f32 %v1342_v55, %v588_v57 }
 0x77e   :  { %v597_v61 = vmul.f32 %v586_v59, %v563_v32 }
 0x77f   :  { %v590_v63 = vmul.f32 0.5, %v589_v60 }
 0x780   :  { %v602_v0 = vmul.f32 %v1307_v58, %v597_v61 }
 0x781   :  { %v591_v1 = vsub.f32 1.5, %v590_v63 }
 0x782   :  { %v1627_v2 = vadd.f32 %v1308_v62, %v602_v0 }
 0x783   :  { %v592_v3 = vmul.f32 %v1342_v55, %v591_v1 }
 0x784   :  { %1251 = vmatmul.msk.f32.vlgmr.msra.gmra.mxu2 %vm62_vm0, %v1627_v2 }
 0x785   :  { %v596_v6 = vsel %vm595_vm3, %v1342_v55, %v592_v3  ;;  %v1249_v3 = vld [vmem:[%s1801_s3 + $0x38] sm:$0xff] }
 0x786   :  { %v598_v7 = vmul.f32 %v596_v6, %v564_v37  ;;  %v1248_v6 = vld [vmem:[%s1801_s3 + $0x30] sm:$0xff] }
 0x788   :  { %v603_v8 = vmul.f32 %v1307_v58, %v598_v7  ;;  %v1247_v7 = vld [vmem:[%s1801_s3 + $0x28] sm:$0xff] }
 0x78a   :  { %v1631_v9 = vadd.f32 %v1308_v62, %v603_v8  ;;  %v1246_v8 = vld [vmem:[%s1801_s3 + $0x20] sm:$0xff] }
 0x78c   :  { %1252 = vmatmul.msk.f32.gmra.mxu2 %vm62_vm0, %v1631_v9 }
 0x807   :  { %v646_v11 = vpop.f32.mrf.mxu2 }
 0x808   :  { %v1638_v12 = vadd.f32 %v1309_v10, %v646_v11 }
 0x80a   :  { %663 = vrot.lane.b32.xlu1 %v1638_v12, %s1368_s18  ;;  %659 = vrot.lane.b32.xlu0 %v1638_v12, %s1367_s17 }
 0x80f   :  { %v649_v13 = vpop.f32.mrf.mxu2 }
 0x810   :  { %v1644_v14 = vadd.f32 %v1309_v10, %v649_v13 }
 0x812   :  { %661 = vrot.lane.b32.xlu2 %v1644_v14, %s1367_s17 }
 0x86c   :  { %v662_v15 = vpop.permute.xlu2 %661 }
 0x86d   :  { %741 = vrot.lane.b32.xlu2 %v662_v15, %s1368_s18 }
 0x87c   :  { %v660_v16 = vpop.permute.xlu0 %659  ;;  %v664_v17 = vpop.permute.xlu1 %663 }
 0x87d   :  { %715 = vrot.lane.b32.xlu0 %v660_v16, %s1368_s18  ;;  %1253 = vmatpush.xpose.msk.msra.mxu3 %vm105_vm1, %v664_v17 }
 0x880   :  { %1254 = vmatmul.msk.f32.vlgmr.msra.gmra.mxu3 %vm105_vm1, %v1638_v12 }
 0x885   :  { %689 = vrot.lane.b32.xlu0 %v1644_v14, %s1368_s18 }
 0x8c7   :  { %v742_v18 = vpop.permute.xlu2 %741 }
 0x8c8   :  { %1259 = vmatpush.xpose.msk.msrb.mxu3 %vm105_vm1, %v742_v18 }
 0x8cb   :  { %1260 = vmatmul.msk.f32.vlgmr.msrb.gmra.mxu3 %vm105_vm1, %v662_v15 }
 0x8ef   :  { %v716_v19 = vpop.permute.xlu0 %715 }
 0x8f0   :  { %1257 = vmatpush.xpose.msk.msrb.mxu2 %vm105_vm1, %v716_v19 }
 0x8f3   :  { %1258 = vmatmul.msk.f32.vlgmr.msrb.gmra.mxu2 %vm105_vm1, %v660_v16 }
 0x8f7   :  { %v690_v20 = vpop.permute.xlu0 %689 }
 0x8f8   :  { %1255 = vmatpush.xpose.msk.msra.mxu0 %vm105_vm1, %v690_v20 }
 0x8fb   :  { %1256 = vmatmul.msk.f32.vlgmr.msra.gmra.mxu0 %vm105_vm1, %v1644_v14 }
 0x903   :  { %v686_v21 = vpop.f32.mrf.mxu3 }
 0x904   :  { %v767_v22 = vsel %vm208_vm2, %v686_v21, -inf }
 0x905   :  { %768 = vmax.xlane.f32.xlu0 %v767_v22 }
 0x94e   :  { %v764_v23 = vpop.f32.mrf.mxu3 }
 0x94f   :  { %v776_v24 = vsel %vm208_vm2, %v764_v23, -inf }
 0x950   :  { %777 = vmax.xlane.f32.xlu2 %v776_v24 }
 0x976   :  { %v738_v25 = vpop.f32.mrf.mxu2 }
 0x977   :  { %v773_v26 = vsel %vm208_vm2, %v738_v25, -inf }
 0x978   :  { %774 = vmax.xlane.f32.xlu1 %v773_v26  ;;  %v712_v27 = vpop.f32.mrf.mxu0  ;;  %v769_v4 = vpop.xlane.xlu0 %768 }
 0x979   :  { %v779_v29 = vsub.f32 %v686_v21, %v769_v4  ;;  %v770_v30 = vsel %vm208_vm2, %v712_v27, -inf }
 0x97a   :  { %771 = vmax.xlane.f32.xlu2 %v770_v30 }
 0x97b   :  { %v783_v31 = vmul.f32 1.442695, %v779_v29 }
 0x97d   :  { %1343 = vpow2.f32 %v783_v31 }
 0x983   :  { %v1344_v5 = vpop.eup %1343 }
 0x984   :  { %v791_v32 = vsel %vm208_vm2, %v1344_v5, 0.0 }
 0x985   :  { %792 = vadd.xlane.f32.xlu0 %v791_v32 }
 0x992   :  { %889 = vrot.lane.b32.xlu2 %v662_v15, %s1369_s0 }
 0x9c3   :  { %v778_v33 = vpop.xlane.xlu2 %777 }
 0x9c4   :  { %v782_v34 = vsub.f32 %v764_v23, %v778_v33  ;;  %v1271_v33 = vld [vmem:[%s1806_s5 + $0x30] sm:$0xff] }
 0x9c6   :  { %v789_v35 = vmul.f32 1.442695, %v782_v34  ;;  %v1270_v34 = vld [vmem:[%s1806_s5 + $0x28] sm:$0xff] }
 0x9c8   :  { %1345 = vpow2.f32 %v789_v35  ;;  %v1269_v35 = vld [vmem:[%s1806_s5 + $0x20] sm:$0xff] }
 0x9ce   :  { %v1346_v36 = vpop.eup %1345 }
 0x9cf   :  { %v800_v37 = vsel %vm208_vm2, %v1346_v36, 0.0 }
 0x9d0   :  { %801 = vadd.xlane.f32.xlu0 %v800_v37 }
 0x9eb   :  { %v775_v38 = vpop.xlane.xlu1 %774 }
 0x9ec   :  { %v781_v39 = vsub.f32 %v738_v25, %v775_v38 }
 0x9ed   :  { %v772_v40 = vpop.xlane.xlu2 %771 }
 0x9ee   :  { %v787_v41 = vmul.f32 1.442695, %v781_v39  ;;  %v780_v42 = vsub.f32 %v712_v27, %v772_v40  ;;  %v1283_v39 = vld [vmem:[%s1807_s7 + $0x78] sm:$0xff]  ;;  %v1282_v40 = vld [vmem:[%s1807_s7 + $0x70] sm:$0xff] }
 0x9f0   :  { %1347 = vpow2.f32 %v787_v41  ;;  %v785_v43 = vmul.f32 1.442695, %v780_v42  ;;  %v1281_v41 = vld [vmem:[%s1807_s7 + $0x68] sm:$0xff] }
 0x9f2   :  { %1349 = vpow2.f32 %v785_v43 }
 0x9f5   :  { %v890_v44 = vpop.permute.xlu2 %889 }
 0x9f6   :  { %v1348_v45 = vpop.eup %1347  ;;  %910 = vmatpush.msra.mxu3 %v890_v44  ;;  %v1280_v44 = vld [vmem:[%s1807_s7 + $0x60] sm:$0xff] }
 0x9f7   :  { %v797_v46 = vsel %vm208_vm2, %v1348_v45, 0.0 }
 0x9f8   :  { %v1350_v47 = vpop.eup %1349  ;;  %798 = vadd.xlane.f32.xlu1 %v797_v46  ;;  %v793_v49 = vpop.xlane.xlu0 %792 }
 0x9f9   :  { %v794_v48 = vsel %vm208_vm2, %v1350_v47, 0.0 }
 0x9fa   :  { %795 = vadd.xlane.f32.xlu0 %v794_v48 }
 0xa0e   :  { %811 = vrot.lane.b32.xlu0 %v1638_v12, %s1369_s0 }
 0xa11   :  { %863 = vrot.lane.b32.xlu1 %v660_v16, %s1369_s0  ;;  %v1310_v16 = vld [vmem:[%s1802_s4 + $0x1] ss:$0 sm:$0xff] }
 0xa19   :  { %837 = vrot.lane.b32.xlu1 %v1644_v14, %s1369_s0 }
 0xa43   :  { %v802_v50 = vpop.xlane.xlu0 %801 }
 0xa44   :  { %1351 = vrcp.f32 %v802_v50 }
 0xa45   :  { %1353 = vrcp.f32 %v793_v49 }
 0xa4a   :  { %v1352_v51 = vpop.eup %1351 }
 0xa4b   :  { %v810_v52 = vmul.f32 %v1352_v51, %v1346_v36  ;;  %v1354_v55 = vpop.eup %1353 }
 0xa4c   :  { %v807_v57 = vmul.f32 %v1354_v55, %v1344_v5  ;;  %v1311_v55 = vld [vmem:[%s1803_s9 + $0x1] ss:$0 sm:$0xff] }
 0xa4d   :  { %1264 = vmatmul.msk.f32.vlgmr.msra.gmra.mxu3 %vm208_vm2, %v810_v52 }
 0xa6b   :  { %v799_v53 = vpop.xlane.xlu1 %798 }
 0xa6c   :  { %1355 = vrcp.f32 %v799_v53 }
 0xa6d   :  { %v796_v54 = vpop.xlane.xlu0 %795 }
 0xa6e   :  { %1357 = vrcp.f32 %v796_v54 }
 0xa72   :  { %v1356_v56 = vpop.eup %1355 }
 0xa73   :  { %v809_v59 = vmul.f32 %v1356_v56, %v1348_v45 }
 0xa74   :  { %v1358_v61 = vpop.eup %1357 }
 0xa75   :  { %v808_v62 = vmul.f32 %v1358_v61, %v1350_v47  ;;  %v1279_v47 = vld [vmem:[%s1807_s7 + $0x58] sm:$0xff] }
 0xa80   :  { %v812_v58 = vpop.permute.xlu0 %811 }
 0xa81   :  { %832 = vmatpush.msrb.mxu0 %v812_v58  ;;  %v1304_v58 = vld [vmem:[%s1804_s10 + $0x1] ss:$0 sm:$0xff] }
 0xa82   :  { %1261 = vmatmul.msk.f32.vlgmr.msrb.gmra.mxu0 %vm208_vm2, %v807_v57 }
 0xa83   :  { %v864_v60 = vpop.permute.xlu1 %863  ;;  %943 = vmatpush.msra.mxu0 %v1249_v3 }
 0xa84   :  { %884 = vmatpush.msra.mxu2 %v864_v60 }
 0xa85   :  { %1263 = vmatmul.msk.f32.vlgmr.msra.gmra.mxu2 %vm208_vm2, %v809_v59  ;;  %944 = vmatpush.msra.mxu0 %v1248_v6 }
 0xa86   :  { %1087 = vmatpush.msrb.mxu2 %v1283_v39  ;;  %v1183_v39 = vld [vmem:[%s1812_s13 + $0x10] sm:$0xff] }
 0xa87   :  { %945 = vmatpush.msra.mxu0 %v1247_v7 }
 0xa88   :  { %1088 = vmatpush.msrb.mxu2 %v1282_v40  ;;  %v1182_v40 = vld [vmem:[%s1812_s13 + $0x8] sm:$0xff] }
 0xa89   :  { %946 = vmatpush.msra.mxu0 %v1246_v8  ;;  %v1278_v8 = vld [vmem:[%s1807_s7 + $0x50] sm:$0xff] }
 0xa8a   :  { %1089 = vmatpush.msrb.mxu2 %v1281_v41  ;;  %v1181_v41 = vld [vmem:[%s1812_s13] sm:$0xff] }
 0xa8b   :  { %v838_v63 = vpop.permute.xlu1 %837 }
 0xa8c   :  { %858 = vmatpush.msra.mxu1 %v838_v63  ;;  %1090 = vmatpush.msrb.mxu2 %v1280_v44 }
 0xa8d   :  { %1262 = vmatmul.msk.f32.vlgmr.msra.gmra.mxu1 %vm208_vm2, %v808_v62 }
 0xa8e   :  { %1091 = vmatpush.msrb.mxu2 %v1279_v47 }
 0xa90   :  { %1092 = vmatpush.msrb.mxu2 %v1278_v8 }
 0xad0   :  { %v912_v0 = vpop.f32.mrf.mxu3 }
 0xad1   :  { %919 = vrot.lane.b32.xlu1 %v912_v0, %s1370_s25 }
 0xaff   :  { %v834_v10 = vpop.f32.mrf.mxu0 }
 0xb08   :  { %v886_v1 = vpop.f32.mrf.mxu2 }
 0xb09   :  { %917 = vrot.lane.b32.xlu2 %v886_v1, %s1370_s25 }
 0xb0a   :  { %v860_v14 = vpop.f32.mrf.mxu1 }
 0xb43   :  { %v920_v13 = vpop.permute.xlu1 %919 }
 0xb44   :  { %v924_v15 = vsel %vm105_vm1, %v860_v14, %v920_v13 }
 0xb63   :  { %v918_v11 = vpop.permute.xlu2 %917 }
 0xb64   :  { %v923_v12 = vsel %vm105_vm1, %v834_v10, %v918_v11  ;;  %v1277_v10 = vld [vmem:[%s1807_s7 + $0x48] sm:$0xff]  ;;  %v1276_v11 = vld [vmem:[%s1807_s7 + $0x40] sm:$0xff] }
 0xb65   :  { %1265 = vmatmul.msk.f32.vlgmr.msra.gmra.mxu0 %vm62_vm0, %v923_v12  ;;  %1093 = vmatpush.msrb.mxu2 %v1277_v10  ;;  %v1312_v12 = vld [vmem:[%s1805_s6 + $0x1] ss:$0 sm:$0xff] }
 0xb67   :  { %1094 = vmatpush.msrb.mxu2 %v1276_v11 }
 0xb6d   :  { %1266 = vmatmul.msk.f32.gmra.mxu0 %vm62_vm0, %v924_v15 }
 0xbe2   :  { %v948_v17 = vpop.f32.mrf.mxu0 }
 0xbe3   :  { %v957_v18 = vadd.f32 %v1310_v16, %v948_v17 }
 0xbe5   :  { %v959_v19 = vadd.f32 %v957_v18, %v1627_v2 }
 0xbe7   :  { %v965_v20 = vsel %vm62_vm0, %v959_v19, 0.0 }
 0xbe8   :  { %966 = vadd.xlane.f32.xlu2 %v965_v20 }
 0xbea   :  { %v951_v21 = vpop.f32.mrf.mxu0 }
 0xbeb   :  { %v958_v22 = vadd.f32 %v1310_v16, %v951_v21 }
 0xbed   :  { %v960_v23 = vadd.f32 %v958_v22, %v1631_v9  ;;  %v1272_v9 = vld [vmem:[%s1806_s5 + $0x38] sm:$0xff] }
 0xbee   :  { %1044 = vmatpush.msrb.mxu1 %v1272_v9 }
 0xbef   :  { %v968_v24 = vsel %vm62_vm0, %v960_v23, 0.0 }
 0xbf0   :  { %969 = vadd.xlane.f32.xlu1 %v968_v24  ;;  %1045 = vmatpush.msrb.mxu1 %v1271_v33 }
 0xbf2   :  { %1046 = vmatpush.msrb.mxu1 %v1270_v34 }
 0xbf4   :  { %1047 = vmatpush.msrb.mxu1 %v1269_v35 }
 0xc5b   :  { %v967_v25 = vpop.xlane.xlu2 %966 }
 0xc5c   :  { %v971_v26 = vmul.f32 %v967_v25, %v1541_v28 }
 0xc5e   :  { %v973_v27 = vsub.f32 %v959_v19, %v971_v26  ;;  %v1313_v19 = vld [vmem:[%s1808_s8 + $0x1] ss:$0 sm:$0xff] }
 0xc60   :  { %v975_v4 = vmul.f32 %v973_v27, %v973_v27 }
 0xc62   :  { %v977_v29 = vsel %vm62_vm0, %v975_v4, 0.0 }
 0xc63   :  { %978 = vadd.xlane.f32.xlu0 %v977_v29  ;;  %v970_v30 = vpop.xlane.xlu1 %969 }
 0xc64   :  { %v972_v2 = vmul.f32 %v970_v30, %v1541_v28 }
 0xc66   :  { %v974_v31 = vsub.f32 %v960_v23, %v972_v2 }
 0xc68   :  { %v976_v5 = vmul.f32 %v974_v31, %v974_v31 }
 0xc6a   :  { %v980_v32 = vsel %vm62_vm0, %v976_v5, 0.0 }
 0xc6b   :  { %981 = vadd.xlane.f32.xlu2 %v980_v32 }
 0xcd6   :  { %v979_v36 = vpop.xlane.xlu0 %978 }
 0xcd7   :  { %v983_v37 = vmul.f32 %v979_v36, %v1541_v28 }
 0xcd9   :  { %v985_v38 = vadd.f32 1e-05, %v983_v37 }
 0xcdb   :  { %1359 = vrsqrt.f32 %v985_v38  ;;  %vm993_vm2 = vweird.f32 %v985_v38 }
 0xcde   :  { %v982_v42 = vpop.xlane.xlu2 %981 }
 0xcdf   :  { %v984_v43 = vmul.f32 %v982_v42, %v1541_v28 }
 0xce1   :  { %v1360_v45 = vpop.eup %1359  ;;  %v986_v46 = vadd.f32 1e-05, %v984_v43 }
 0xce2   :  { %v988_v48 = vmul.f32 %v1360_v45, %v985_v38  ;;  %vm994_vm1 = vweird.f32 %v1360_v45  ;;  %v1184_v38 = vld [vmem:[%s1812_s13 + $0x18] sm:$0xff] }
 0xce3   :  { %1361 = vrsqrt.f32 %v986_v46  ;;  %vm995_vm4 = vmor %vm993_vm2, %vm994_vm1  ;;  %vm1003_vm6 = vweird.f32 %v986_v46  ;;  %1207 = vmatpush.msrb.mxu3 %v1184_v38 }
 0xce4   :  { %v989_v49 = vmul.f32 %v1360_v45, %v988_v48 }
 0xce5   :  { %1208 = vmatpush.msrb.mxu3 %v1183_v39 }
 0xce6   :  { %v990_v50 = vmul.f32 0.5, %v989_v49 }
 0xce7   :  { %1209 = vmatpush.msrb.mxu3 %v1182_v40 }
 0xce8   :  { %v991_v51 = vsub.f32 1.5, %v990_v50 }
 0xce9   :  { %v1362_v52 = vpop.eup %1361  ;;  %1210 = vmatpush.msrb.mxu3 %v1181_v41 }
 0xcea   :  { %v992_v53 = vmul.f32 %v1360_v45, %v991_v51  ;;  %v998_v54 = vmul.f32 %v1362_v52, %v986_v46  ;;  %vm1004_vm5 = vweird.f32 %v1362_v52 }
 0xceb   :  { %vm1005_vm7 = vmor %vm1003_vm6, %vm1004_vm5 }
 0xcec   :  { %v996_v56 = vsel %vm995_vm4, %v1360_v45, %v992_v53  ;;  %v999_v57 = vmul.f32 %v1362_v52, %v998_v54  ;;  %v1314_v53 = vld [vmem:[%s1809_s11 + $0x1] ss:$0 sm:$0xff] }
 0xced   :  { %v1007_v59 = vmul.f32 %v996_v56, %v973_v27 }
 0xcee   :  { %v1000_v60 = vmul.f32 0.5, %v999_v57 }
 0xcef   :  { %v1012_v61 = vmul.f32 %v1311_v55, %v1007_v59 }
 0xcf0   :  { %v1001_v62 = vsub.f32 1.5, %v1000_v60 }
 0xcf1   :  { %v1017_v63 = vadd.f32 %v1304_v58, %v1012_v61 }
 0xcf2   :  { %v1002_v0 = vmul.f32 %v1362_v52, %v1001_v62 }
 0xcf3   :  { %1274 = vmatmul.msk.f32.vlgmr.msrb.gmra.mxu1 %vm62_vm0, %v1017_v63 }
 0xcf4   :  { %v1006_v1 = vsel %vm1005_vm7, %v1362_v52, %v1002_v0 }
 0xcf5   :  { %v1008_v3 = vmul.f32 %v1006_v1, %v974_v31 }
 0xcf7   :  { %v1013_v6 = vmul.f32 %v1311_v55, %v1008_v3  ;;  %v1315_v55 = vld [vmem:[%s1810_s12 + $0x1] ss:$0 sm:$0xff] }
 0xcf9   :  { %v1018_v7 = vadd.f32 %v1304_v58, %v1013_v6 }
 0xcfb   :  { %1275 = vmatmul.msk.f32.gmra.mxu1 %vm62_vm0, %v1018_v7 }
 0xd70   :  { %v1049_v13 = vpop.f32.mrf.mxu1 }
 0xd71   :  { %v1058_v14 = vadd.f32 %v1312_v12, %v1049_v13 }
 0xd73   :  { %v1060_v15 = vmax.f32 %v1058_v14, 0.0 }
 0xd75   :  { %1285 = vmatmul.msk.f32.vlgmr.msrb.gmra.mxu2 %vm516_vm10, %v1060_v15 }
 0xd78   :  { %v1052_v16 = vpop.f32.mrf.mxu1 }
 0xd79   :  { %v1059_v17 = vadd.f32 %v1312_v12, %v1052_v16 }
 0xd7b   :  { %v1061_v18 = vmax.f32 %v1059_v17, 0.0 }
 0xd7d   :  { %1286 = vmatmul.msk.f32.gmra.mxu2 %vm516_vm10, %v1061_v18 }
 0xdf8   :  { %v1096_v20 = vpop.f32.mrf.mxu2 }
 0xdf9   :  { %v1105_v21 = vadd.f32 %v1313_v19, %v1096_v20 }
 0xdfb   :  { %v1107_v22 = vadd.f32 %v1105_v21, %v1017_v63  ;;  %v1316_v21 = vld [vmem:[%s1811_s14] ss:$0 sm:$0xff] }
 0xdfd   :  { %v1113_v23 = vsel %vm62_vm0, %v1107_v22, 0.0 }
 0xdfe   :  { %1114 = vadd.xlane.f32.xlu1 %v1113_v23 }
 0xe00   :  { %v1099_v24 = vpop.f32.mrf.mxu2 }
 0xe01   :  { %v1106_v25 = vadd.f32 %v1313_v19, %v1099_v24 }
 0xe03   :  { %v1108_v26 = vadd.f32 %v1106_v25, %v1018_v7 }
 0xe05   :  { %v1116_v27 = vsel %vm62_vm0, %v1108_v26, 0.0 }
 0xe06   :  { %1117 = vadd.xlane.f32.xlu0 %v1116_v27 }
 0xe71   :  { %v1115_v4 = vpop.xlane.xlu1 %1114 }
 0xe72   :  { %v1119_v29 = vmul.f32 %v1115_v4, %v1541_v28 }
 0xe74   :  { %v1121_v30 = vsub.f32 %v1107_v22, %v1119_v29 }
 0xe76   :  { %v1123_v2 = vmul.f32 %v1121_v30, %v1121_v30 }
 0xe78   :  { %v1125_v31 = vsel %vm62_vm0, %v1123_v2, 0.0 }
 0xe79   :  { %v1118_v5 = vpop.xlane.xlu0 %1117  ;;  %1126 = vadd.xlane.f32.xlu2 %v1125_v31 }
 0xe7a   :  { %v1120_v32 = vmul.f32 %v1118_v5, %v1541_v28 }
 0xe7c   :  { %v1122_v9 = vsub.f32 %v1108_v26, %v1120_v32 }
 0xe7e   :  { %v1124_v33 = vmul.f32 %v1122_v9, %v1122_v9 }
 0xe80   :  { %v1128_v34 = vsel %vm62_vm0, %v1124_v33, 0.0 }
 0xe81   :  { %1129 = vadd.xlane.f32.xlu1 %v1128_v34 }
 0xeec   :  { %v1127_v35 = vpop.xlane.xlu2 %1126 }
 0xeed   :  { %v1131_v36 = vmul.f32 %v1127_v35, %v1541_v28 }
 0xeef   :  { %v1133_v37 = vadd.f32 1e-05, %v1131_v36 }
 0xef1   :  { %1363 = vrsqrt.f32 %v1133_v37  ;;  %vm1141_vm9 = vweird.f32 %v1133_v37 }
 0xef4   :  { %v1130_v42 = vpop.xlane.xlu1 %1129 }
 0xef5   :  { %v1132_v43 = vmul.f32 %v1130_v42, %v1541_v28 }
 0xef7   :  { %v1364_v44 = vpop.eup %1363  ;;  %v1134_v45 = vadd.f32 1e-05, %v1132_v43 }
 0xef8   :  { %v1136_v46 = vmul.f32 %v1364_v44, %v1133_v37  ;;  %vm1142_vm8 = vweird.f32 %v1364_v44 }
 0xef9   :  { %1365 = vrsqrt.f32 %v1134_v45  ;;  %vm1143_vm10 = vmor %vm1141_vm9, %vm1142_vm8  ;;  %vm1151_vm12 = vweird.f32 %v1134_v45 }
 0xefa   :  { %v1137_v47 = vmul.f32 %v1364_v44, %v1136_v46 }
 0xefc   :  { %v1138_v48 = vmul.f32 0.5, %v1137_v47 }
 0xefe   :  { %v1139_v49 = vsub.f32 1.5, %v1138_v48 }
 0xeff   :  { %v1366_v50 = vpop.eup %1365 }
 0xf00   :  { %v1140_v51 = vmul.f32 %v1364_v44, %v1139_v49  ;;  %v1146_v52 = vmul.f32 %v1366_v50, %v1134_v45  ;;  %vm1152_vm11 = vweird.f32 %v1366_v50 }
 0xf01   :  { %vm1153_vm13 = vmor %vm1151_vm12, %vm1152_vm11 }
 0xf02   :  { %v1144_v54 = vsel %vm1143_vm10, %v1364_v44, %v1140_v51  ;;  %v1147_v28 = vmul.f32 %v1366_v50, %v1146_v52 }
 0xf03   :  { %v1155_v56 = vmul.f32 %v1144_v54, %v1121_v30 }
 0xf04   :  { %v1148_v57 = vmul.f32 0.5, %v1147_v28 }
 0xf05   :  { %v1160_v58 = vmul.f32 %v1314_v53, %v1155_v56 }
 0xf06   :  { %v1149_v59 = vsub.f32 1.5, %v1148_v57 }
 0xf07   :  { %v1165_v60 = vadd.f32 %v1315_v55, %v1160_v58 }
 0xf08   :  { %v1150_v61 = vmul.f32 %v1366_v50, %v1149_v59 }
 0xf09   :  { %v1167_v62 = vsel %vm62_vm0, %v1165_v60, -inf }
 0xf0a   :  { %v1154_v63 = vsel %vm1153_vm13, %v1366_v50, %v1150_v61  ;;  %v1168_v0 = vrot.slane %v1167_v62, 4 }
 0xf0b   :  { %v1156_v1 = vmul.f32 %v1154_v63, %v1122_v9 }
 0xf0c   :  { %v1169_v3 = vmax.f32 %v1167_v62, %v1168_v0 }
 0xf0d   :  { %v1161_v6 = vmul.f32 %v1314_v53, %v1156_v1 }
 0xf0e   :  { %v1170_v8 = vrot.slane %v1169_v3, 2 }
 0xf0f   :  { %v1166_v7 = vadd.f32 %v1315_v55, %v1161_v6 }
 0xf10   :  { %v1171_v12 = vmax.f32 %v1169_v3, %v1170_v8 }
 0xf11   :  { %v1174_v10 = vsel %vm62_vm0, %v1166_v7, -inf }
 0xf12   :  { %v1175_v11 = vrot.slane %v1174_v10, 4  ;;  %v1172_v15 = vrot.slane %v1171_v12, 1 }
 0xf14   :  { %v1176_v13 = vmax.f32 %v1174_v10, %v1175_v11  ;;  %v1173_v18 = vmax.f32 %v1171_v12, %v1172_v15 }
 0xf16   :  { %v1177_v14 = vrot.slane %v1176_v13, 2 }
 0xf18   :  { %v1178_v16 = vmax.f32 %v1176_v13, %v1177_v14 }
 0xf1a   :  { %v1179_v17 = vrot.slane %v1178_v16, 1 }
 0xf1c   :  { %v1180_v19 = vmax.f32 %v1178_v16, %v1179_v17 }
 0xf1e   :  { %v1192_v20 = vsel %vm1191_vm14, %v1180_v19, %v1173_v18 }
 0xf1f   :  { %1289 = vmatmul.msk.f32.vlgmr.msrb.gmra.mxu3 %vm62_vm0, %v1192_v20 }
 0xfa2   :  { %v1212_v22 = vpop.f32.mrf.mxu3 }
 0xfa3   :  { %v1213_v23 = vadd.f32 %v1316_v21, %v1212_v22 }
 0xfa5   :  { %1216 = vst.msk [vmem:[%s1813_s15] sm:$0x3] %vm1215_vm15, %v1213_v23 }

</bundles_post_ra>
